<compile_context>
chip_gen: v7x
topology: tpu7x:2x2x1
jax: 0.10.0
libtpu: 0.0.40
codegen_flags: <defaults>
</compile_context>

<pallas_src>
import functools

import jax
import jax.numpy as jnp
from jax import lax
from jax.experimental import pallas as pl
from jax.experimental.pallas import tpu as pltpu


def _linear_attention_kernel(x_ref, wqkv_ref, wout_ref, params_ref, mask_ref,
                             o_ref, *, heads, dim_head, eps, mxu_dtype,
                             use_vpu_qkv, batch_block):
    hidden = heads * dim_head
    C = x_ref.shape[1]

    # Loop-invariant loads / casts hoisted out of the batch loop.
    g = params_ref[:, 0:1]                         # LN gamma   (C, 1)
    b_ln = params_ref[:, 1:2]                      # LN beta    (C, 1)
    b_out = params_ref[:, 2:3]                     # out bias   (C, 1)
    mask = mask_ref[...]                           # (hidden, hidden) {0,1} f32
    wqkv = wqkv_ref[...]                           # (3*hidden, C), q-scale folded
    wqkv_m = wqkv.astype(mxu_dtype)
    wout_m = wout_ref[...].astype(mxu_dtype)       # (C, hidden)

    dn_ctx = (((1,), (1,)), ((), ()))   # contract the L (lane) axis
    dn_out = (((0,), (0,)), ((), ()))   # contract ctx's d axis with q's d axis

    def body(b, carry):
        xb = x_ref[b].astype(jnp.float32)          # (C, L)

        # --- LayerNorm over channels (sublane axis), per position ----------
        mean = jnp.mean(xb, axis=0, keepdims=True)
        var = jnp.mean(jnp.square(xb - mean), axis=0, keepdims=True)
        xn = (xb - mean) * lax.rsqrt(var + eps) * g + b_ln   # rsqrt -> EUP

        # --- to_qkv: 1x1 conv == channel matmul -----------------------------
        if use_vpu_qkv:
            # Shallow contraction (K = C small): C broadcast-FMAs on the VPU;
            # avoids an MXU pass that is almost entirely padding and skips the
            # bf16 cast of the full (3*hidden, L) slab.
            qkv = wqkv[:, 0:1] * xn[0:1, :]
            for c in range(1, C):
                qkv = qkv + wqkv[:, c:c + 1] * xn[c:c + 1, :]
        else:
            qkv = jnp.dot(wqkv_m, xn.astype(mxu_dtype),
                          preferred_element_type=jnp.float32)  # (3*hidden, L)

        q = qkv[:hidden]                    # scale already folded into W_qkv
        k = qkv[hidden:2 * hidden]
        v = qkv[2 * hidden:]

        # --- softmax over the sequence (lane) axis, all heads at once -------
        k = jnp.exp(k - jnp.max(k, axis=-1, keepdims=True))
        k = k * pl.reciprocal(jnp.sum(k, axis=-1, keepdims=True), approx=True)
        # TODO(synk): on v6e/v7x the exp could run in bf16 on the EUP for ~2x
        # transcendental throughput; kept f32 for numerical parity.

        # --- attention: one full-width masked MXU matmul per contraction ----
        # ctx[d, e] = sum_n k[d, n] * v[e, n]
        ctx = lax.dot_general(k.astype(mxu_dtype), v.astype(mxu_dtype),
                              dn_ctx, preferred_element_type=jnp.float32)
        ctx = (ctx * mask).astype(mxu_dtype)        # zero cross-head entries
        # out[e, n] = sum_d ctx[d, e] * q[d, n]
        ob = lax.dot_general(ctx, q.astype(mxu_dtype),
                             dn_out, preferred_element_type=jnp.float32)

        # --- to_out fused per batch element + residual with normalized x ----
        y = jnp.dot(wout_m, ob.astype(mxu_dtype),
                    preferred_element_type=jnp.float32) + b_out + xn
        o_ref[b] = y.astype(o_ref.dtype)
        return carry

    lax.fori_loop(0, batch_block, body, 0,
                  unroll=2 if batch_block >= 2 else 1)


def _vmem_budget_bytes():
    """Physical VMEM minus headroom (v7x-safe: never exceeds 64 MiB there)."""
    phys = 64 * 2**20          # conservative fallback = v7x per-TC VMEM
    try:
        info = pltpu.get_tpu_info()
        phys = int(getattr(info, "vmem_capacity_bytes", phys))
    except Exception:
        pass
    return max(16 * 2**20, phys - 8 * 2**20)


def _pick_batch_block(batch, channels, seq_len, itemsize, vmem_budget_bytes):
    """Largest batch block whose double-buffered in/out tiles fit ~half the
    VMEM budget, while keeping >= 2 grid steps when batch >= 2 so both v7x
    TensorCores get work (v5e/v6e have 1 TC, unaffected)."""
    per_batch_tile = max(1, channels * seq_len * itemsize)
    cap = max(1, (vmem_budget_bytes // 2) // (4 * per_batch_tile))
    if batch >= 2:
        cap = min(cap, batch // 2)
    divisors = [d for d in range(1, batch + 1) if batch % d == 0 and d <= cap]
    return max(divisors) if divisors else 1


def linear_attention(x, g, bln, w_qkv, w_out, b_out, *, heads, dim_head,
                     eps=1e-5, mxu_dtype=jnp.bfloat16):
    """x: (B, C, L) in the native PyTorch Conv1d layout.  Returns (B, C, L).

    mxu_dtype: operand dtype at the MXU (accumulation stays f32).  bf16 is the
    default on all generations (the MXU takes bf16 natively on v5e too); pass
    jnp.float32 for training-parity numerics.
    """
    B, C, L = x.shape
    hidden = heads * dim_head
    assert w_qkv.shape == (3 * hidden, C)
    assert w_out.shape == (C, hidden)

    budget = _vmem_budget_bytes()
    bb = _pick_batch_block(B, C, L, x.dtype.itemsize, budget)
    grid = (B // bb,)

    # Fold the q scale into the first `hidden` rows of W_qkv (genuine weight
    # fold — to_qkv has no bias, so this is exact and one-time O(hidden*C)).
    w_qkv_f = jnp.asarray(w_qkv, jnp.float32).at[:hidden].multiply(
        dim_head ** -0.5)

    # LN gamma/beta and out-bias packed into one tiny (C, 3) DMA.
    params = jnp.concatenate(
        [jnp.reshape(g, (C, 1)), jnp.reshape(bln, (C, 1)),
         jnp.reshape(b_out, (C, 1))], axis=1).astype(jnp.float32)

    # Static block-diagonal head mask, built once (not per grid step).
    head_id = jnp.arange(hidden, dtype=jnp.int32) // dim_head
    head_mask = (head_id[:, None] == head_id[None, :]).astype(jnp.float32)

    use_vpu_qkv = C <= 16

    kernel = functools.partial(
        _linear_attention_kernel, heads=heads, dim_head=dim_head, eps=eps,
        mxu_dtype=mxu_dtype, use_vpu_qkv=use_vpu_qkv, batch_block=bb)

    # Honest VMEM estimate (bytes, counted once): double-buffered in/out
    # blocks + constant-index weights/mask/params + per-batch f32 working set.
    itm = x.dtype.itemsize
    est = (4 * bb * C * L * itm
           + 2 * 4 * (3 * hidden * C + C * hidden + C * 3 + hidden * hidden)
           + 4 * (3 * hidden * L + 2 * hidden * hidden + 2 * hidden * L
                  + 6 * C * L))
    vmem_limit = int(min(budget, max(32 * 2**20, 2 * est)))  # 2x safety, <= phys-8MiB

    out = pl.pallas_call(
        kernel,
        out_shape=jax.ShapeDtypeStruct((B, C, L), x.dtype),
        grid_spec=pltpu.PrefetchScalarGridSpec(
            num_scalar_prefetch=0,
            grid=grid,
            in_specs=[
                pl.BlockSpec((bb, C, L), lambda i: (i, 0, 0)),      # x
                pl.BlockSpec((3 * hidden, C), lambda i: (0, 0)),    # W_qkv
                pl.BlockSpec((C, hidden), lambda i: (0, 0)),        # W_out
                pl.BlockSpec((C, 3), lambda i: (0, 0)),             # g|b_ln|b_out
                pl.BlockSpec((hidden, hidden), lambda i: (0, 0)),   # head mask
            ],
            out_specs=pl.BlockSpec((bb, C, L), lambda i: (i, 0, 0)),
        ),
        compiler_params=pltpu.CompilerParams(
            dimension_semantics=("parallel",),
            vmem_limit_bytes=vmem_limit),
    )(x, w_qkv_f, w_out, params, head_mask)
    return out


def _reference(x, g, bln, w_qkv, w_out, b_out, *, heads, dim_head, eps=1e-5):
    """Pure-JAX replica of the PyTorch forward for verification."""
    B, C, L = x.shape
    hidden = heads * dim_head
    mean = jnp.mean(x, axis=1, keepdims=True)
    var = jnp.mean((x - mean) ** 2, axis=1, keepdims=True)
    xn = (x - mean) / jnp.sqrt(var + eps) * g[None, :, :] + bln[None, :, :]

    qkv = jnp.einsum('oc,bcl->bol', w_qkv, xn)
    q, k, v = jnp.split(qkv, 3, axis=1)
    rearr = lambda t: t.reshape(B, heads, dim_head, L)
    q, k, v = rearr(q), rearr(k), rearr(v)
    q = q * (dim_head ** -0.5)
    k = jax.nn.softmax(k, axis=-1)
    context = jnp.einsum('bhdn,bhen->bhde', k, v)
    out = jnp.einsum('bhde,bhdn->bhen', context, q)
    out = out.reshape(B, hidden, L)
    out = jnp.einsum('oc,bcl->bol', w_out, out) + b_out[None, :, :]
    return out + xn


if __name__ == "__main__":
    # Module config: dim=4 channels, heads=4, dim_head=32 -> hidden=128
    B, dim, L = 2, 4, 16
    heads, dim_head = 4, 32
    hidden = heads * dim_head

    key = jax.random.PRNGKey(0)
    kx, kqkv, kwo, kbo = jax.random.split(key, 4)

    x = jax.random.normal(kx, (B, dim, L), dtype=jnp.float32)

    # LayerNorm params (PyTorch init: ones / zeros), stored as (C, 1)
    g = jnp.ones((dim, 1), dtype=jnp.float32)
    bln = jnp.zeros((dim, 1), dtype=jnp.float32)

    # Conv1d 1x1 weights -> plain matrices (out_ch, in_ch)
    w_qkv = jax.random.normal(kqkv, (3 * hidden, dim), dtype=jnp.float32) * 0.1
    w_out = jax.random.normal(kwo, (dim, hidden), dtype=jnp.float32) * 0.1
    b_out = jax.random.normal(kbo, (dim, 1), dtype=jnp.float32) * 0.1

    ref = _reference(x, g, bln, w_qkv, w_out, b_out,
                     heads=heads, dim_head=dim_head)

    # f32-at-the-MXU path (training-parity numerics).
    out_f32 = linear_attention(x, g, bln, w_qkv, w_out, b_out,
                               heads=heads, dim_head=dim_head,
                               mxu_dtype=jnp.float32)
    out_f32 = jax.block_until_ready(out_f32)
    assert out_f32.shape == (B, dim, L)
    assert jnp.allclose(out_f32, ref, atol=5e-3, rtol=5e-3), \
        "f32 mismatch vs reference"

    # bf16-at-the-MXU path (default; recommended on all generations).
    out_bf16 = linear_attention(x, g, bln, w_qkv, w_out, b_out,
                                heads=heads, dim_head=dim_head)
    out_bf16 = jax.block_until_ready(out_bf16)
    assert out_bf16.shape == (B, dim, L)
    assert jnp.allclose(out_bf16, ref, atol=5e-2, rtol=5e-2), \
        "bf16 mismatch vs reference"

    print("KERNEL_OK")
</pallas_src>

<mosaic_0001>
module attributes {stable_mosaic.version = 11 : i64} {
  func.func @_linear_attention_kernel(%arg0: i32, %arg1: memref<1x4x16xf32, #tpu.memory_space<vmem>>, %arg2: memref<384x4xf32, #tpu.memory_space<vmem>>, %arg3: memref<4x128xf32, #tpu.memory_space<vmem>>, %arg4: memref<4x3xf32, #tpu.memory_space<vmem>>, %arg5: memref<128x128xf32, #tpu.memory_space<vmem>>, %arg6: memref<1x4x16xf32, #tpu.memory_space<vmem>>) attributes {dimension_semantics = [#tpu.dimension_semantics<parallel>], iteration_bounds = array<i64: 2>, scalar_prefetch = 0 : i64, scratch_operands = 0 : i64, tpu.core_type = #tpu.core_type<tc>, window_params = [{transform_indices = @transform_0, window_bounds = array<i64: 1, 4, 16>}, {pipeline_mode = #tpu.pipeline_mode<synchronous>, transform_indices = @transform_1, window_bounds = array<i64: 384, 4>}, {pipeline_mode = #tpu.pipeline_mode<synchronous>, transform_indices = @transform_2, window_bounds = array<i64: 4, 128>}, {pipeline_mode = #tpu.pipeline_mode<synchronous>, transform_indices = @transform_3, window_bounds = array<i64: 4, 3>}, {pipeline_mode = #tpu.pipeline_mode<synchronous>, transform_indices = @transform_4, window_bounds = array<i64: 128, 128>}, {transform_indices = @transform_5, window_bounds = array<i64: 1, 4, 16>}]} {
    %c0 = arith.constant 0 : index
    %c0_0 = arith.constant 0 : index
    %0 = vector.load %arg4[%c0, %c0_0] : memref<4x3xf32, #tpu.memory_space<vmem>>, vector<4x1xf32>
    %c0_1 = arith.constant 0 : index
    %c1 = arith.constant 1 : index
    %1 = vector.load %arg4[%c0_1, %c1] : memref<4x3xf32, #tpu.memory_space<vmem>>, vector<4x1xf32>
    %c0_2 = arith.constant 0 : index
    %c2 = arith.constant 2 : index
    %2 = vector.load %arg4[%c0_2, %c2] : memref<4x3xf32, #tpu.memory_space<vmem>>, vector<4x1xf32>
    %c0_3 = arith.constant 0 : index
    %c0_4 = arith.constant 0 : index
    %3 = vector.load %arg5[%c0_3, %c0_4] : memref<128x128xf32, #tpu.memory_space<vmem>>, vector<128x128xf32>
    %c0_5 = arith.constant 0 : index
    %c0_6 = arith.constant 0 : index
    %4 = vector.load %arg2[%c0_5, %c0_6] : memref<384x4xf32, #tpu.memory_space<vmem>>, vector<384x4xf32>
    %c0_7 = arith.constant 0 : index
    %c0_8 = arith.constant 0 : index
    %5 = vector.load %arg3[%c0_7, %c0_8] : memref<4x128xf32, #tpu.memory_space<vmem>>, vector<4x128xf32>
    %c0_i32 = arith.constant 0 : i32
    %6 = arith.index_cast %c0_i32 : i32 to index
    %c0_9 = arith.constant 0 : index
    %c0_10 = arith.constant 0 : index
    %7 = vector.load %arg1[%6, %c0_9, %c0_10] : memref<1x4x16xf32, #tpu.memory_space<vmem>>, vector<1x4x16xf32>
    %8 = vector.shape_cast %7 : vector<1x4x16xf32> to vector<4x16xf32>
    %cst = arith.constant dense<0.000000e+00> : vector<16xf32>
    %9 = vector.multi_reduction <add>, %8, %cst [0] : vector<4x16xf32> to vector<16xf32>
    %10 = vector.shape_cast %9 : vector<16xf32> to vector<1x16xf32>
    %cst_11 = arith.constant 4.000000e+00 : f32
    %11 = vector.broadcast %cst_11 : f32 to vector<1x16xf32>
    %12 = arith.divf %10, %11 : vector<1x16xf32>
    %13 = vector.broadcast %12 : vector<1x16xf32> to vector<4x16xf32>
    %14 = arith.subf %8, %13 : vector<4x16xf32>
    %15 = arith.mulf %14, %14 : vector<4x16xf32>
    %cst_12 = arith.constant dense<0.000000e+00> : vector<16xf32>
    %16 = vector.multi_reduction <add>, %15, %cst_12 [0] : vector<4x16xf32> to vector<16xf32>
    %17 = vector.shape_cast %16 : vector<16xf32> to vector<1x16xf32>
    %cst_13 = arith.constant 4.000000e+00 : f32
    %18 = vector.broadcast %cst_13 : f32 to vector<1x16xf32>
    %19 = arith.divf %17, %18 : vector<1x16xf32>
    %20 = vector.broadcast %12 : vector<1x16xf32> to vector<4x16xf32>
    %21 = arith.subf %8, %20 : vector<4x16xf32>
    %cst_14 = arith.constant 9.99999974E-6 : f32
    %22 = vector.broadcast %cst_14 : f32 to vector<1x16xf32>
    %23 = arith.addf %19, %22 : vector<1x16xf32>
    %24 = math.rsqrt %23 : vector<1x16xf32>
    %25 = vector.broadcast %24 : vector<1x16xf32> to vector<4x16xf32>
    %26 = arith.mulf %21, %25 : vector<4x16xf32>
    %27 = vector.broadcast %0 : vector<4x1xf32> to vector<4x16xf32>
    %28 = arith.mulf %26, %27 : vector<4x16xf32>
    %29 = vector.broadcast %1 : vector<4x1xf32> to vector<4x16xf32>
    %30 = arith.addf %28, %29 : vector<4x16xf32>
    %31 = vector.extract_strided_slice %4 {offsets = [0, 0], sizes = [384, 1], strides = [1, 1]} : vector<384x4xf32> to vector<384x1xf32>
    %32 = vector.extract_strided_slice %30 {offsets = [0, 0], sizes = [1, 16], strides = [1, 1]} : vector<4x16xf32> to vector<1x16xf32>
    %33 = vector.broadcast %31 : vector<384x1xf32> to vector<384x16xf32>
    %34 = vector.broadcast %32 : vector<1x16xf32> to vector<384x16xf32>
    %35 = arith.mulf %33, %34 : vector<384x16xf32>
    %36 = vector.extract_strided_slice %4 {offsets = [0, 1], sizes = [384, 1], strides = [1, 1]} : vector<384x4xf32> to vector<384x1xf32>
    %37 = vector.extract_strided_slice %30 {offsets = [1, 0], sizes = [1, 16], strides = [1, 1]} : vector<4x16xf32> to vector<1x16xf32>
    %38 = vector.broadcast %36 : vector<384x1xf32> to vector<384x16xf32>
    %39 = vector.broadcast %37 : vector<1x16xf32> to vector<384x16xf32>
    %40 = arith.mulf %38, %39 : vector<384x16xf32>
    %41 = arith.addf %35, %40 : vector<384x16xf32>
    %42 = vector.extract_strided_slice %4 {offsets = [0, 2], sizes = [384, 1], strides = [1, 1]} : vector<384x4xf32> to vector<384x1xf32>
    %43 = vector.extract_strided_slice %30 {offsets = [2, 0], sizes = [1, 16], strides = [1, 1]} : vector<4x16xf32> to vector<1x16xf32>
    %44 = vector.broadcast %42 : vector<384x1xf32> to vector<384x16xf32>
    %45 = vector.broadcast %43 : vector<1x16xf32> to vector<384x16xf32>
    %46 = arith.mulf %44, %45 : vector<384x16xf32>
    %47 = arith.addf %41, %46 : vector<384x16xf32>
    %48 = vector.extract_strided_slice %4 {offsets = [0, 3], sizes = [384, 1], strides = [1, 1]} : vector<384x4xf32> to vector<384x1xf32>
    %49 = vector.extract_strided_slice %30 {offsets = [3, 0], sizes = [1, 16], strides = [1, 1]} : vector<4x16xf32> to vector<1x16xf32>
    %50 = vector.broadcast %48 : vector<384x1xf32> to vector<384x16xf32>
    %51 = vector.broadcast %49 : vector<1x16xf32> to vector<384x16xf32>
    %52 = arith.mulf %50, %51 : vector<384x16xf32>
    %53 = arith.addf %47, %52 : vector<384x16xf32>
    %54 = vector.extract_strided_slice %53 {offsets = [0, 0], sizes = [128, 16], strides = [1, 1]} : vector<384x16xf32> to vector<128x16xf32>
    %55 = vector.extract_strided_slice %53 {offsets = [128, 0], sizes = [128, 16], strides = [1, 1]} : vector<384x16xf32> to vector<128x16xf32>
    %56 = vector.extract_strided_slice %53 {offsets = [256, 0], sizes = [128, 16], strides = [1, 1]} : vector<384x16xf32> to vector<128x16xf32>
    %cst_15 = arith.constant dense<0xFF800000> : vector<128xf32>
    %57 = vector.multi_reduction <maximumf>, %55, %cst_15 [1] : vector<128x16xf32> to vector<128xf32>
    %58 = vector.shape_cast %57 : vector<128xf32> to vector<128x1xf32>
    %59 = vector.broadcast %58 : vector<128x1xf32> to vector<128x16xf32>
    %60 = arith.subf %55, %59 : vector<128x16xf32>
    %61 = math.exp %60 : vector<128x16xf32>
    %cst_16 = arith.constant dense<0.000000e+00> : vector<128xf32>
    %62 = vector.multi_reduction <add>, %61, %cst_16 [1] : vector<128x16xf32> to vector<128xf32>
    %63 = vector.shape_cast %62 : vector<128xf32> to vector<128x1xf32>
    %64 = tpu.reciprocal %63 {approx = true} : vector<128x1xf32> -> vector<128x1xf32>
    %65 = vector.broadcast %64 : vector<128x1xf32> to vector<128x16xf32>
    %66 = arith.mulf %61, %65 : vector<128x16xf32>
    %cst_17 = arith.constant dense<0.000000e+00> : vector<128x128xf32>
    %67 = tpu.matmul %66, %56, %cst_17 {dimension_numbers = #tpu.dot_dimension_numbers<[1], [1], [0], [0], [0, 0, 1, 0], [], []>} : vector<128x16xf32>, vector<128x16xf32>, vector<128x128xf32> -> vector<128x128xf32>
    %68 = arith.mulf %67, %3 : vector<128x128xf32>
    %cst_18 = arith.constant dense<0.000000e+00> : vector<128x16xf32>
    %69 = tpu.matmul %68, %54, %cst_18 {dimension_numbers = #tpu.dot_dimension_numbers<[0], [0], [1], [1], [0, 1, 1, 1], [], []>} : vector<128x128xf32>, vector<128x16xf32>, vector<128x16xf32> -> vector<128x16xf32>
    %cst_19 = arith.constant dense<0.000000e+00> : vector<4x16xf32>
    %70 = tpu.matmul %5, %69, %cst_19 {dimension_numbers = #tpu.dot_dimension_numbers<[1], [0], [0], [1], [0, 0, 1, 1], [], []>} : vector<4x128xf32>, vector<128x16xf32>, vector<4x16xf32> -> vector<4x16xf32>
    %71 = vector.broadcast %2 : vector<4x1xf32> to vector<4x16xf32>
    %72 = arith.addf %70, %71 : vector<4x16xf32>
    %73 = arith.addf %72, %30 : vector<4x16xf32>
    %74 = arith.index_cast %c0_i32 : i32 to index
    %c0_20 = arith.constant 0 : index
    %c0_21 = arith.constant 0 : index
    %75 = vector.load %arg6[%74, %c0_20, %c0_21] : memref<1x4x16xf32, #tpu.memory_space<vmem>>, vector<1x4x16xf32>
    %76 = vector.shape_cast %75 : vector<1x4x16xf32> to vector<4x16xf32>
    %77 = vector.shape_cast %73 : vector<4x16xf32> to vector<1x4x16xf32>
    tpu.vector_store %arg6[%74, %c0_20, %c0_21], %77 {strides = array<i32>} : memref<1x4x16xf32, #tpu.memory_space<vmem>>, vector<1x4x16xf32>,
    %c1_i32 = arith.constant 1 : i32
    return
  }
  func.func @transform_0(%arg0: i32) -> (i32, i32, i32) {
    %c0_i32 = arith.constant 0 : i32
    %c0_i32_0 = arith.constant 0 : i32
    %c0_i32_1 = arith.constant 0 : i32
    return %arg0, %c0_i32, %c0_i32_0 : i32, i32, i32
  }
  func.func @transform_1(%arg0: i32) -> (i32, i32) {
    %c0_i32 = arith.constant 0 : i32
    %c0_i32_0 = arith.constant 0 : i32
    %c0_i32_1 = arith.constant 0 : i32
    return %c0_i32, %c0_i32_0 : i32, i32
  }
  func.func @transform_2(%arg0: i32) -> (i32, i32) {
    %c0_i32 = arith.constant 0 : i32
    %c0_i32_0 = arith.constant 0 : i32
    %c0_i32_1 = arith.constant 0 : i32
    return %c0_i32, %c0_i32_0 : i32, i32
  }
  func.func @transform_3(%arg0: i32) -> (i32, i32) {
    %c0_i32 = arith.constant 0 : i32
    %c0_i32_0 = arith.constant 0 : i32
    %c0_i32_1 = arith.constant 0 : i32
    return %c0_i32, %c0_i32_0 : i32, i32
  }
  func.func @transform_4(%arg0: i32) -> (i32, i32) {
    %c0_i32 = arith.constant 0 : i32
    %c0_i32_0 = arith.constant 0 : i32
    %c0_i32_1 = arith.constant 0 : i32
    return %c0_i32, %c0_i32_0 : i32, i32
  }
  func.func @transform_5(%arg0: i32) -> (i32, i32, i32) {
    %c0_i32 = arith.constant 0 : i32
    %c0_i32_0 = arith.constant 0 : i32
    %c0_i32_1 = arith.constant 0 : i32
    return %arg0, %c0_i32, %c0_i32_0 : i32, i32, i32
  }
}

</mosaic_0001>

<bundles_post_ra>
// kernel: tpu_custom_call.1
= control target key start
LH: loop header
LB: loop body
LE: loop exit
PB: predicated region body
PF: predicated region fallthrough
CT: control target
= control target key end

     0   :  { %10 = vsyncpa [#allocation3], 0  ;;  %s4292_s0 = inlined_call_operand.vmem [shape: f32[2,4,16], index: 0, kind: input, shape index: {}]   ;;  %s4293_s1 = inlined_call_operand.vmem [shape: f32[384,4], index: 1, kind: input, shape index: {}]   ;;  %s4294_s2 = inlined_call_operand.vmem [shape: f32[4,128], index: 2, kind: input, shape index: {}]   ;;  %s4295_s3 = inlined_call_operand.vmem [shape: f32[4,3], index: 3, kind: input, shape index: {}]   ;;  %s4296_s4 = inlined_call_operand.vmem [shape: f32[128,128], index: 4, kind: input, shape index: {}]   ;;  %s4297_s5 = inlined_call_operand.hbm [shape: f32[2,4,16], index: 5, kind: output, shape index: {}]  }
   0x1   :  { %12 = vsyncpa [#allocation3 + $0x1], 0  ;;  %s2939_s18 = smov 0   ;;  %s2941_s19 = smov 0  }
   0x2   :  { %s2943_s20 = smov 0   ;;  %s2945_s21 = smov 0  }
   0x3 LB: > { %s2960_s22 = sadd.s32 4294967295, %s2899_s21   ;;  %s2249_s23 = sadd.s32 4294967294, %s2899_s21   ;;  %s2899_s21 = sphi %s2945_s21, %s4373_s21   ;;  %s2895_s20 = sphi %s2943_s20, %s4372_s20   ;;  %s2891_s19 = sphi %s2941_s19, %s4371_s19   ;;  %s2887_s18 = sphi %s2939_s18, %s4370_s18  }
   0x4   : > { %s2964_s24 = sadd.s32 1, %s2899_s21   ;;  %s135_s25 = sadd.s32 1, %s2895_s20 }
   0x5   : > { %s132_s26 = ssub.s32 %s2899_s21, %s2964_s24  ;;  %p145_p0 = scmp.ne.s32.totalorder %s2895_s20, %s2891_s19 }
   0x6   : > { %p133_p1 = scmp.eq.s32.totalorder %s132_s26, 0  ;;  %p146_p2 = scmp.eq.s32.totalorder %s2960_s22, 1 }
   0x7   : > { %p151_p3 = scmp.ne.s32.totalorder %s2891_s19, %s2887_s18  ;;  %p152_p4 = scmp.eq.s32.totalorder %s2249_s23, 1 }
   0x8   : > { %s2975_s27 = scalar_select %p133_p1, %s2895_s20, %s135_s25  }
   0x9   : > { %p2977_p5 = por %p146_p2, %p145_p0  ;;  %p2981_p6 = por %p152_p4, %p151_p3 }
   0xa   : > { %p2252_p7 = scmp.ge.s32.totalorder %s2899_s21, 1  ;;  %p189_p8 = scmp.lt.s32.totalorder %s2899_s21, 3 }
   0xc   : > { %p190_p9 = pnand %p2252_p7, %p189_p8 }
   0xe   : > { %193 = sbr.rel (%p190_p9) target bundleno = 1680 (0x690), region = 40 }
  0x15   : > { %v253_v0 = vld [vmem:[%s4293_s1 + $0x80] sm:$0xff]  ;;  %v4300_v2 = vmov 0   ;;  %v4302_v3 = vmov 1   ;;  %v4298_v4 = vmov 3   ;;  %v3003_v5 = vld [vmem:[%s4293_s1 + $0x88] sm:$0xff]  ;;  %v255_v6 = vld [vmem:[%s4293_s1 + $0x90] sm:$0xff] }
  0x16   : > { %v2993_v1 = vld [vmem:[%s4295_s3] sm:$0xf]  ;;  %2670 = vset.pattern.permute.xlu1 %v4300_v2  ;;  %2669 = vset.pattern.permute.xlu0 %v4300_v2  ;;  %v4304_v7 = vmov 2   ;;  %v256_v8 = vld [vmem:[%s4293_s1 + $0x98] sm:$0xff]  ;;  %v258_v10 = vld [vmem:[%s4293_s1 + $0xa8] sm:$0xff]  ;;  %p216_p10 = scmp.lt.s32.totalorder %s2960_s22, 1 }
  0x17   : > { %403 = vperm.xlu1 %2670, %v253_v0   ;;  %312 = vperm.xlu0 %2669, %v2993_v1   ;;  %v257_v9 = vld [vmem:[%s4293_s1 + $0xa0] sm:$0xff]  ;;  %v259_v11 = vld [vmem:[%s4293_s1 + $0xb0] sm:$0xff]  ;;  %v260_v12 = vld [vmem:[%s4293_s1 + $0xb8] sm:$0xff]  ;;  %vm287_vm0 = vcmask 125952   ;;  %vm1489_vm1 = vcmask 130048   ;;  %vm2906_vm3 = vmmov 0  }
  0x18   : > { %v261_v13 = vld [vmem:[%s4293_s1 + $0xc0] sm:$0xff]  ;;  %v262_v14 = vld [vmem:[%s4293_s1 + $0xc8] sm:$0xff]  ;;  %v3041_v15 = vld [vmem:[%s4293_s1 + $0xd0] sm:$0xff]  ;;  %s217_s30 = scalar_select %p216_p10, %s2960_s22, 1 }
  0x19   : > { %v3048_v16 = vld [vmem:[%s4293_s1 + $0xd8] sm:$0xff]  ;;  %v3055_v17 = vld [vmem:[%s4293_s1 + $0xe0] sm:$0xff]  ;;  %v3062_v18 = vld [vmem:[%s4293_s1 + $0xe8] sm:$0xff]  ;;  %s213_s16 = sand.u32 1, %s2891_s19   ;;  %s2288_s23 = sshll.u32 %s2960_s22, 6 }
  0x1a   : > { %v3078_v19 = vld [vmem:[%s4293_s1 + $0xf8] sm:$0xff]  ;;  %s2254_s6 = sshll.u32 %s217_s30, 2  ;;  %v267_v50 = vld [vmem:[%s4293_s1 + $0xf0] sm:$0xff]  ;;  %vm3767_vm2 = vmpackc.low %vm1489_vm1, %vm1489_vm1  ;;  %s2253_s17 = sshll.u32 %s213_s16, 2 }
  0x1b   : > { %2671 = vset.pattern.permute.xlu1 %v4302_v3  ;;  %2676 = vset.pattern.permute.xlu0 %v4298_v4  ;;  %s219_s9 = scalar_lea.vmem %s4292_s0, %s2254_s6  ;;  %s215_s25 = scalar_lea.vmem [#allocation2], %s2253_s17 }
  0x1c   : > { %678 = vperm.xlu1 %2671, %v253_v0   ;;  %1262 = vperm.xlu0 %2676, %v253_v0   ;;  %v286_v22 = vld [vmem:[%s219_s9] sm:$0xf]  ;;  %s2190_s26 = sshll.u32 %s215_s25, 4  ;;  %s4249_s7 = scalar_lea.hbm %s4297_s5, %s2288_s23  ;;  %s4251_s26 = int_to_ptr.vmem [resolvable:$true] %s2190_s26 }
  0x1d   : > { %v288_v23 = vsel %vm287_vm0, %v286_v22, 0.0  ;;  %s2177_s8 = scalar_lea.sflag [#allocation3], %s213_s16  ;;  %s2837_s22 = scalar_lea.vmem %s4251_s26, 64 }
  0x1e   : > { %v289_v26 = vrot.slane %v288_v23, 4  ;;  %p2838_p11 = scmp.ne.s32.totalorder %s4251_s26, %s2837_s22  ;;  %s2908_s9 = smov [#allocation2]  }
  0x1f   : > { %s2841_s10 = sshll.u32 %s2908_s9, 4  ;;  %s2842_s10 = int_to_ptr.vmem [resolvable:$false] %s2841_s10 }
  0x20   : > { %2672 = vset.pattern.permute.xlu1 %v4300_v2  ;;  %1266 = vperm.xlu0 %2676, %v3003_v5   ;;  %v290_v29 = vadd.f32 %v289_v26, %v288_v23  ;;  %p2839_p12 = pnand %p2838_p11, %p2977_p5  ;;  %s2843_s11 = scalar_lea.vmem %s2842_s10, 128 }
  0x21   : > { %408 = vperm.xlu1 %2672, %v3003_v5   ;;  %p2844_p0 = scmp.lt.s32.totalorder %s4251_s26, %s2842_s10  ;;  %p2845_p1 = scmp.lt.s32.totalorder %s2843_s11, %s2837_s22 }
  0x22   : > { %v291_v32 = vrot.slane %v290_v29, 2  ;;  %p2840_p13 = pneg %p2839_p12 }
  0x23   : > { %p2846_p2 = por %p2845_p1, %p2844_p0 }
  0x24   : > { %1270 = vperm.xlu0 %2676, %v255_v6   ;;  %v292_v34 = vadd.f32 %v291_v32, %v290_v29 }
  0x25   : > { %2673 = vset.pattern.permute.xlu1 %v4304_v7  ;;  %p2847_p3 = pnand %p2846_p2, %p2840_p13 }
  0x26   : > { %970 = vperm.xlu1 %2673, %v253_v0   ;;  %v293_v37 = vrot.slane %v292_v34, 1 }
  0x28   : > { %1274 = vperm.xlu0 %2676, %v256_v8   ;;  %v294_v40 = vadd.f32 %v293_v37, %v292_v34  ;;  %v561_v34 = vlaneseq }
  0x2a   : > { %2674 = vset.pattern.permute.xlu1 %v4300_v2  ;;  %v296_v43 = vmul.f32 0.25, %v294_v40  ;;  %v562_v40 = vshrl.u32 %v561_v34, 7 }
  0x2b   : > { %413 = vperm.xlu1 %2674, %v255_v6  }
  0x2c   : > { %1278 = vperm.xlu0 %2676, %v257_v9   ;;  %v297_v46 = vsub.f32 %v286_v22, %v296_v43 }
  0x2e   : > { %v298_v48 = vmul.f32 %v297_v46, %v297_v46 }
  0x2f   : > { %2675 = vset.pattern.permute.xlu1 %v4302_v3 }
  0x30   : > { %686 = vperm.xlu1 %2675, %v255_v6   ;;  %1282 = vperm.xlu0 %2676, %v258_v10   ;;  %v299_v52 = vsel %vm287_vm0, %v298_v48, 0.0 }
  0x31   : > { %v300_v55 = vrot.slane %v299_v52, 4 }
  0x33   : > { %v301_v58 = vadd.f32 %v300_v55, %v299_v52  ;;  %v563_v52 = vsub.s32 0, %v562_v40  ;;  %v807_v55 = vsub.s32 1, %v562_v40 }
  0x34   : > { %2677 = vset.pattern.permute.xlu1 %v4300_v2  ;;  %1286 = vperm.xlu0 %2676, %v259_v11  }
  0x35   : > { %418 = vperm.xlu1 %2677, %v256_v8   ;;  %v302_v60 = vrot.slane %v301_v58, 2 }
  0x37   : > { %v303_v63 = vadd.f32 %v302_v60, %v301_v58 }
  0x38   : > { %1290 = vperm.xlu0 %2676, %v260_v12  }
  0x39   : > { %2678 = vset.pattern.permute.xlu1 %v4302_v3 }
  0x3a   : > { %690 = vperm.xlu1 %2678, %v256_v8  }
  0x3c   : > { %1294 = vperm.xlu0 %2676, %v261_v13  }
  0x3e   : > { %2679 = vset.pattern.permute.xlu1 %v4304_v7 }
  0x3f   : > { %978 = vperm.xlu1 %2679, %v255_v6  }
  0x40   : > { %1298 = vperm.xlu0 %2676, %v262_v14  }
  0x43   : > { %2680 = vset.pattern.permute.xlu1 %v4300_v2 }
  0x44   : > { %423 = vperm.xlu1 %2680, %v257_v9   ;;  %1302 = vperm.xlu0 %2676, %v3041_v15  }
  0x48   : > { %2681 = vset.pattern.permute.xlu1 %v4302_v3  ;;  %1306 = vperm.xlu0 %2676, %v3048_v16  }
  0x49   : > { %694 = vperm.xlu1 %2681, %v257_v9  }
  0x4c   : > { %1310 = vperm.xlu0 %2676, %v3055_v17  }
  0x4d   : > { %2682 = vset.pattern.permute.xlu1 %v4300_v2 }
  0x4e   : > { %428 = vperm.xlu1 %2682, %v258_v10  }
  0x50   : > { %1314 = vperm.xlu0 %2676, %v3062_v18  }
  0x52   : > { %2683 = vset.pattern.permute.xlu1 %v4302_v3 }
  0x53   : > { %698 = vperm.xlu1 %2683, %v258_v10  }
  0x54   : > { %2708 = vset.pattern.permute.xlu0 %v4304_v7 }
  0x55   : > { %974 = vperm.xlu0 %2708, %v3003_v5  }
  0x57   : > { %2684 = vset.pattern.permute.xlu1 %v4304_v7 }
  0x58   : > { %986 = vperm.xlu1 %2684, %v257_v9  }
  0x59   : > { %982 = vperm.xlu0 %2708, %v256_v8  }
  0x5c   : > { %2685 = vset.pattern.permute.xlu1 %v4300_v2 }
  0x5d   : > { %433 = vperm.xlu1 %2685, %v259_v11   ;;  %990 = vperm.xlu0 %2708, %v258_v10  }
  0x61   : > { %2686 = vset.pattern.permute.xlu1 %v4302_v3  ;;  %998 = vperm.xlu0 %2708, %v260_v12  }
  0x62   : > { %702 = vperm.xlu1 %2686, %v259_v11  }
  0x65   : > { %1006 = vperm.xlu0 %2708, %v262_v14  }
  0x66   : > { %2687 = vset.pattern.permute.xlu1 %v4300_v2 }
  0x67   : > { %438 = vperm.xlu1 %2687, %v260_v12  }
  0x69   : > { %1014 = vperm.xlu0 %2708, %v3048_v16  }
  0x6b   : > { %2688 = vset.pattern.permute.xlu1 %v4302_v3 }
  0x6c   : > { %706 = vperm.xlu1 %2688, %v260_v12  }
  0x6d   : > { %1022 = vperm.xlu0 %2708, %v3062_v18  }
  0x70   : > { %2689 = vset.pattern.permute.xlu1 %v4304_v7 }
  0x71   : > { %994 = vperm.xlu1 %2689, %v259_v11   ;;  %1030 = vperm.xlu0 %2708, %v3078_v19  }
  0x75   : > { %2690 = vset.pattern.permute.xlu1 %v4300_v2  ;;  %2710 = vset.pattern.permute.xlu0 %v4302_v3 }
  0x76   : > { %443 = vperm.xlu1 %2690, %v261_v13   ;;  %317 = vperm.xlu0 %2710, %v2993_v1  }
  0x7a   : > { %2691 = vset.pattern.permute.xlu1 %v4302_v3  ;;  %682 = vperm.xlu0 %2710, %v3003_v5   ;;  %v304_v5 = vrot.slane %v303_v63, 1 }
  0x7b   : > { %710 = vperm.xlu1 %2691, %v261_v13  }
  0x7c   : > { %v305_v9 = vadd.f32 %v304_v5, %v303_v63  ;;  %v1099_v63 = vsub.s32 2, %v562_v40 }
  0x7e   : > { %v306_v12 = vmul.f32 0.25, %v305_v9 }
  0x7f   : > { %2692 = vset.pattern.permute.xlu1 %v4300_v2 }
  0x80   : > { %448 = vperm.xlu1 %2692, %v262_v14  }
  0x84   : > { %2693 = vset.pattern.permute.xlu1 %v4302_v3 }
  0x85   : > { %714 = vperm.xlu1 %2693, %v262_v14   ;;  %v307_v14 = vadd.f32 1e-05, %v306_v12  ;;  %v1391_v12 = vsub.s32 3, %v562_v40 }
  0x87   : > { %2770 = vrsqrt.f32 %v307_v14 }
  0x89   : > { %2694 = vset.pattern.permute.xlu1 %v4304_v7 }
  0x8a   : > { %1002 = vperm.xlu1 %2694, %v261_v13  }
  0x8e   : > { %2695 = vset.pattern.permute.xlu1 %v4300_v2 }
  0x8f   : > { %453 = vperm.xlu1 %2695, %v3041_v15  }
  0x91   : > { %v2771_v26 = vpop.eup %2770 }
  0x92   : > { %v309_v37 = vmul.f32 %v2771_v26, %v297_v46 }
  0x93   : > { %2696 = vset.pattern.permute.xlu1 %v4302_v3 }
  0x94   : > { %718 = vperm.xlu1 %2696, %v3041_v15  }
  0x96   : > { %v3099_v20 = vpop.permute.xlu1 %403  ;;  %v3101_v21 = vpop.permute.xlu0 %312 }
  0x98   : > { %2697 = vset.pattern.permute.xlu1 %v4300_v2 }
  0x99   : > { %458 = vperm.xlu1 %2697, %v3048_v16  }
  0x9b   : > { %v3106_v24 = vpop.permute.xlu1 %678  ;;  %v3108_v25 = vpop.permute.xlu0 %1262 }
  0x9d   : > { %2698 = vset.pattern.permute.xlu1 %v4302_v3 }
  0x9e   : > { %722 = vperm.xlu1 %2698, %v3048_v16  }
  0x9f   : > { %v3112_v27 = vpop.permute.xlu0 %1266 }
  0xa0   : > { %v3114_v28 = vpop.permute.xlu1 %408 }
  0xa2   : > { %2699 = vset.pattern.permute.xlu1 %v4304_v7 }
  0xa3   : > { %1010 = vperm.xlu1 %2699, %v3041_v15   ;;  %v3118_v30 = vpop.permute.xlu0 %1270 }
  0xa5   : > { %v3120_v31 = vpop.permute.xlu1 %970 }
  0xa7   : > { %2700 = vset.pattern.permute.xlu1 %v4300_v2  ;;  %v3123_v33 = vpop.permute.xlu0 %1274 }
  0xa8   : > { %463 = vperm.xlu1 %2700, %v3055_v17  }
  0xaa   : > { %v3126_v35 = vpop.permute.xlu1 %413 }
  0xab   : > { %v3128_v36 = vpop.permute.xlu0 %1278 }
  0xac   : > { %2701 = vset.pattern.permute.xlu1 %v4302_v3 }
  0xad   : > { %726 = vperm.xlu1 %2701, %v3055_v17  }
  0xaf   : > { %v3132_v38 = vpop.permute.xlu1 %686  ;;  %v3134_v39 = vpop.permute.xlu0 %1282 }
  0xb1   : > { %2702 = vset.pattern.permute.xlu1 %v4300_v2 }
  0xb2   : > { %468 = vperm.xlu1 %2702, %v3062_v18  }
  0xb3   : > { %v3138_v41 = vpop.permute.xlu0 %1286 }
  0xb4   : > { %v3140_v42 = vpop.permute.xlu1 %418 }
  0xb6   : > { %2703 = vset.pattern.permute.xlu1 %v4302_v3 }
  0xb7   : > { %730 = vperm.xlu1 %2703, %v3062_v18   ;;  %v3144_v44 = vpop.permute.xlu0 %1290 }
  0xb9   : > { %v3146_v45 = vpop.permute.xlu1 %690 }
  0xbb   : > { %2704 = vset.pattern.permute.xlu1 %v4304_v7  ;;  %v3149_v47 = vpop.permute.xlu0 %1294 }
  0xbc   : > { %1018 = vperm.xlu1 %2704, %v3055_v17  }
  0xbe   : > { %v3152_v49 = vpop.permute.xlu1 %978 }
  0xbf   : > { %v3157_v51 = vpop.permute.xlu0 %1298 }
  0xc0   : > { %2705 = vset.pattern.permute.xlu1 %v4300_v2 }
  0xc1   : > { %473 = vperm.xlu1 %2705, %v267_v50  }
  0xc3   : > { %v424_v53 = vpop.permute.xlu1 %423  ;;  %v3161_v54 = vpop.permute.xlu0 %1302 }
  0xc5   : > { %2706 = vset.pattern.permute.xlu1 %v4302_v3 }
  0xc6   : > { %734 = vperm.xlu1 %2706, %v267_v50  }
  0xc7   : > { %v3164_v56 = vpop.permute.xlu0 %1306 }
  0xc8   : > { %v695_v57 = vpop.permute.xlu1 %694 }
  0xca   : > { %2707 = vset.pattern.permute.xlu1 %v4300_v2 }
  0xcb   : > { %478 = vperm.xlu1 %2707, %v3078_v19   ;;  %v3168_v59 = vpop.permute.xlu0 %1310 }
  0xcd   : > { %v429_v61 = vpop.permute.xlu1 %428 }
  0xcf   : > { %2709 = vset.pattern.permute.xlu1 %v4304_v7  ;;  %v3171_v62 = vpop.permute.xlu0 %1314 }
  0xd0   : > { %1026 = vperm.xlu1 %2709, %v267_v50  }
  0xd2   : > { %v699_v0 = vpop.permute.xlu1 %698 }
  0xd4   : > { %2711 = vset.pattern.permute.xlu1 %v4298_v4  ;;  %v3174_v1 = vpop.permute.xlu0 %974 }
  0xd5   : > { %1318 = vperm.xlu1 %2711, %v267_v50   ;;  %v315_v50 = vmul.f32 %v3101_v21, %v309_v37 }
  0xd7   : > { %v3176_v6 = vpop.permute.xlu1 %986 }
  0xd8   : > { %v3178_v8 = vpop.permute.xlu0 %982 }
  0xd9   : > { %1322 = vperm.xlu1 %2711, %v3078_v19  }
  0xdc   : > { %v434_v10 = vpop.permute.xlu1 %433  ;;  %v3181_v11 = vpop.permute.xlu0 %990 }
  0xdd   : > { %2712 = vset.pattern.permute.xlu1 %v4302_v3 }
  0xe0   : > { %v3184_v13 = vpop.permute.xlu0 %998 }
  0xe1   : > { %v703_v15 = vpop.permute.xlu1 %702 }
  0xe4   : > { %v3186_v16 = vpop.permute.xlu0 %1006 }
  0xe6   : > { %v439_v17 = vpop.permute.xlu1 %438 }
  0xe8   : > { %v3188_v18 = vpop.permute.xlu0 %1014 }
  0xeb   : > { %v707_v22 = vpop.permute.xlu1 %706 }
  0xec   : > { %v3190_v23 = vpop.permute.xlu0 %1022 }
  0xf0   : > { %v995_v29 = vpop.permute.xlu1 %994  ;;  %v3192_v32 = vpop.permute.xlu0 %1030 }
  0xf5   : > { %v444_v43 = vpop.permute.xlu1 %443  ;;  %v318_v48 = vpop.permute.xlu0 %317 }
  0xf6   : > { %v3195_v58 = vadd.f32 %v318_v48, %v315_v50 }
  0xf8   : > { %4324 = vst [vmem:[#allocation5_spill] sm:$0xff] %v3195_v58  ;;  %v3198_v5 = vrot.slane %v3195_v58, %v563_v52  ;;  %v3201_v9 = vrot.slane %v3195_v58, %v807_v55  ;;  %v3206_v46 = vrot.slane %v3195_v58, %v1099_v63  ;;  %v3219_v52 = vrot.slane %v3195_v58, %v1391_v12 }
  0xf9   : > { %v683_v50 = vpop.permute.xlu0 %682 }
  0xfa   : > { %v711_v60 = vpop.permute.xlu1 %710  ;;  %v581_v21 = vmul.f32 %v3198_v5, %v3099_v20  ;;  %v825_v26 = vmul.f32 %v3201_v9, %v3106_v24  ;;  %v583_v34 = vmul.f32 %v3198_v5, %v3126_v35  ;;  %v585_v37 = vmul.f32 %v3198_v5, %v424_v53 }
  0xfb   : > { %v827_v40 = vmul.f32 %v3201_v9, %v3132_v38  ;;  %v829_v48 = vmul.f32 %v3201_v9, %v695_v57  ;;  %v582_v20 = vmul.f32 %v3198_v5, %v3114_v28  ;;  %v584_v24 = vmul.f32 %v3198_v5, %v3140_v42 }
  0xfc   : > { %v828_v35 = vmul.f32 %v3201_v9, %v3146_v45  ;;  %v586_v53 = vmul.f32 %v3198_v5, %v429_v61  ;;  %v587_v55 = vmul.f32 %v3198_v5, %v434_v10  ;;  %v588_v38 = vmul.f32 %v3198_v5, %v439_v17 }
  0xfd   : > { %v589_v57 = vmul.f32 %v3198_v5, %v444_v43  ;;  %v830_v63 = vmul.f32 %v3201_v9, %v699_v0  ;;  %v831_v12 = vmul.f32 %v3201_v9, %v703_v15  ;;  %v826_v28 = vmul.f32 %v3201_v9, %v683_v50 }
  0xfe   : > { %v873_v4 = vadd.f32 %v825_v26, %v581_v21  ;;  %v1117_v42 = vmul.f32 %v3206_v46, %v3120_v31  ;;  %v1119_v45 = vmul.f32 %v3206_v46, %v3152_v49  ;;  %v875_v61 = vadd.f32 %v827_v40, %v583_v34 }
  0xff   : > { %v3203_v14 = vpop.permute.xlu1 %448  ;;  %v877_v10 = vadd.f32 %v829_v48, %v585_v37  ;;  %v832_v17 = vmul.f32 %v3201_v9, %v707_v22  ;;  %v1118_v43 = vmul.f32 %v3206_v46, %v3174_v1  ;;  %v874_v0 = vadd.f32 %v826_v28, %v582_v20 }
 0x100   : > { %v876_v3 = vadd.f32 %v828_v35, %v584_v24  ;;  %v1121_v15 = vmul.f32 %v3206_v46, %v3176_v6  ;;  %v1409_v21 = vmul.f32 %v3219_v52, %v3108_v25  ;;  %v1165_v26 = vadd.f32 %v1117_v42, %v873_v4 }
 0x101   : > { %v1167_v31 = vadd.f32 %v1119_v45, %v875_v61  ;;  %v1120_v49 = vmul.f32 %v3206_v46, %v3178_v8  ;;  %v1410_v34 = vmul.f32 %v3219_v52, %v3112_v27  ;;  %v1411_v22 = vmul.f32 %v3219_v52, %v3118_v30 }
 0x102   : > { %v879_v1 = vadd.f32 %v831_v12, %v587_v55  ;;  %v833_v37 = vmul.f32 %v3201_v9, %v711_v60  ;;  %v1169_v40 = vadd.f32 %v1121_v15, %v877_v10  ;;  %v1166_v48 = vadd.f32 %v1118_v43, %v874_v0 }
 0x103   : > { %v3252_v6 = vadd.f32 %v1409_v21, %v1165_v26  ;;  %v1123_v4 = vmul.f32 %v3206_v46, %v995_v29  ;;  %v1413_v25 = vmul.f32 %v3219_v52, %v3128_v36  ;;  %v878_v8 = vadd.f32 %v830_v63, %v586_v53 }
 0x104   : > { %v715_v2 = vpop.permute.xlu1 %714  ;;  %v1168_v20 = vadd.f32 %v1120_v49, %v876_v3  ;;  %v3257_v24 = vadd.f32 %v1410_v34, %v1166_v48  ;;  %v3261_v30 = vadd.f32 %v1411_v22, %v1167_v31  ;;  %v1122_v35 = vmul.f32 %v3206_v46, %v3181_v11 }
 0x105   : > { %v1490_v27 = vsel %vm1489_vm1, %v3252_v6, -inf  ;;  %v1412_v29 = vmul.f32 %v3219_v52, %v3123_v33  ;;  %v881_v55 = vadd.f32 %v833_v37, %v589_v57  ;;  %v1171_v36 = vadd.f32 %v1123_v4, %v879_v1 }
 0x106   : > { %1491 = vmax.xlane.f32.xlu0 %v1490_v27  ;;  %v1493_v3 = vsel %vm1489_vm1, %v3257_v24, -inf  ;;  %v3270_v53 = vadd.f32 %v1413_v25, %v1169_v40  ;;  %v1415_v63 = vmul.f32 %v3219_v52, %v3138_v41  ;;  %v880_v12 = vadd.f32 %v832_v17, %v588_v38 }
 0x107   : > { %1494 = vmax.xlane.f32.xlu1 %v1493_v3  ;;  %v834_v28 = vmul.f32 %v3201_v9, %v715_v2  ;;  %v1170_v11 = vadd.f32 %v1122_v35, %v878_v8  ;;  %v1496_v33 = vsel %vm1489_vm1, %v3261_v30, -inf  ;;  %v3277_v57 = vadd.f32 %v1412_v29, %v1168_v20 }
 0x108   : > { %v1124_v61 = vmul.f32 %v3206_v46, %v3184_v13  ;;  %v590_v10 = vmul.f32 %v3198_v5, %v3203_v14  ;;  %v1414_v41 = vmul.f32 %v3219_v52, %v3134_v39  ;;  %v1417_v2 = vmul.f32 %v3219_v52, %v3149_v47 }
 0x109   : > { %v1003_v50 = vpop.permute.xlu1 %1002  ;;  %v1502_v38 = vsel %vm1489_vm1, %v3270_v53, -inf  ;;  %v3289_v17 = vadd.f32 %v1415_v63, %v1171_v36  ;;  %v1499_v13 = vsel %vm1489_vm1, %v3277_v57, -inf  ;;  %v1126_v39 = vmul.f32 %v3206_v46, %v3186_v16 }
 0x10a   : > { %v1125_v60 = vmul.f32 %v3206_v46, %v1003_v50  ;;  %1497 = vmax.xlane.f32.xlu0 %v1496_v33  ;;  %v882_v43 = vadd.f32 %v834_v28, %v590_v10  ;;  %v3293_v0 = vadd.f32 %v1414_v41, %v1170_v11  ;;  %v1172_v21 = vadd.f32 %v1124_v61, %v880_v12 }
 0x10b   : > { %1503 = vmax.xlane.f32.xlu1 %v1502_v38  ;;  %v1416_v47 = vmul.f32 %v3219_v52, %v3144_v44  ;;  %v1508_v26 = vsel %vm1489_vm1, %v3289_v17, -inf  ;;  %v1418_v16 = vmul.f32 %v3219_v52, %v3157_v51  ;;  %v1128_v51 = vmul.f32 %v3206_v46, %v3188_v18 }
 0x10c   : > { %v1173_v45 = vadd.f32 %v1125_v60, %v881_v55  ;;  %v1505_v31 = vsel %vm1489_vm1, %v3293_v0, -inf  ;;  %v1174_v22 = vadd.f32 %v1126_v39, %v882_v43  ;;  %v1420_v27 = vmul.f32 %v3219_v52, %v3164_v56 }
 0x10d   : > { %v3307_v34 = vadd.f32 %v1416_v47, %v1172_v21  ;;  %v1419_v3 = vmul.f32 %v3219_v52, %v3161_v54  ;;  %v1130_v10 = vmul.f32 %v3206_v46, %v3190_v23  ;;  %v1422_v38 = vmul.f32 %v3219_v52, %v3171_v62 }
 0x10e   : > { %v454_v42 = vpop.permute.xlu1 %453  ;;  %v3295_v14 = vadd.f32 %v1417_v2, %v1173_v45  ;;  %1500 = vmax.xlane.f32.xlu0 %v1499_v13  ;;  %v3313_v37 = vadd.f32 %v1418_v16, %v1174_v22  ;;  %v1421_v47 = vmul.f32 %v3219_v52, %v3168_v59 }
 0x10f   : > { %1509 = vmax.xlane.f32.xlu1 %v1508_v26  ;;  %v1511_v44 = vsel %vm1489_vm1, %v3307_v34, -inf  ;;  %v591_v20 = vmul.f32 %v3198_v5, %v454_v42 }
 0x110   : > { %v1514_v49 = vsel %vm1489_vm1, %v3295_v14, -inf  ;;  %v1517_v25 = vsel %vm1489_vm1, %v3313_v37, -inf }
 0x112   : > { %1506 = vmax.xlane.f32.xlu0 %v1505_v31 }
 0x113   : > { %v719_v15 = vpop.permute.xlu1 %718  ;;  %1515 = vmax.xlane.f32.xlu1 %v1514_v49 }
 0x114   : > { %v835_v4 = vmul.f32 %v3201_v9, %v719_v15 }
 0x116   : > { %1512 = vmax.xlane.f32.xlu0 %v1511_v44  ;;  %v883_v29 = vadd.f32 %v835_v4, %v591_v20  ;;  %v3369_v20 = vld [vmem:[%s4293_s1 + $0x100] sm:$0xff] }
 0x118   : > { %v459_v1 = vpop.permute.xlu1 %458 }
 0x119   : > { %v592_v48 = vmul.f32 %v3198_v5, %v459_v1 }
 0x11a   : > { %1518 = vmax.xlane.f32.xlu0 %v1517_v25 }
 0x11d   : > { %v723_v40 = vpop.permute.xlu1 %722 }
 0x11e   : > { %v836_v50 = vmul.f32 %v3201_v9, %v723_v40 }
 0x120   : > { %v884_v8 = vadd.f32 %v836_v50, %v592_v48 }
 0x122   : > { %v1011_v60 = vpop.permute.xlu1 %1010  ;;  %v1176_v35 = vadd.f32 %v1128_v51, %v884_v8 }
 0x123   : > { %v1127_v55 = vmul.f32 %v3206_v46, %v1011_v60  ;;  %v4325_v60 = vmov 1  }
 0x124   : > { %v3326_v36 = vadd.f32 %v1420_v27, %v1176_v35  ;;  %v3375_v27 = vld [vmem:[%s4293_s1 + $0x108] sm:$0xff]  ;;  %v3391_v35 = vld [vmem:[%s4293_s1 + $0x110] sm:$0xff] }
 0x125   : > { %v1175_v63 = vadd.f32 %v1127_v55, %v883_v29  ;;  %v3398_v29 = vld [vmem:[%s4293_s1 + $0x120] sm:$0xff]  ;;  %v3407_v55 = vld [vmem:[%s4293_s1 + $0x128] sm:$0xff] }
 0x126   : > { %v1523_v18 = vsel %vm1489_vm1, %v3326_v36, -inf }
 0x127   : > { %v464_v12 = vpop.permute.xlu1 %463  ;;  %1524 = vmax.xlane.f32.xlu0 %v1523_v18  ;;  %v3332_v28 = vadd.f32 %v1419_v3, %v1175_v63  ;;  %v3413_v3 = vld [vmem:[%s4293_s1 + $0x130] sm:$0xff]  ;;  %v3420_v63 = vld [vmem:[%s4293_s1 + $0x138] sm:$0xff]  ;;  %v3428_v18 = vld [vmem:[%s4293_s1 + $0x148] sm:$0xff] }
 0x128   : > { %v593_v2 = vmul.f32 %v3198_v5, %v464_v12  ;;  %v3435_v12 = vld [vmem:[%s4293_s1 + $0x140] sm:$0xff] }
 0x129   : > { %v1520_v56 = vsel %vm1489_vm1, %v3332_v28, -inf }
 0x12a   : > { %1521 = vmax.xlane.f32.xlu1 %v1520_v56  ;;  %v3442_v56 = vld [vmem:[%s4293_s1 + $0x150] sm:$0xff] }
 0x12c   : > { %v727_v42 = vpop.permute.xlu1 %726 }
 0x12d   : > { %v837_v54 = vmul.f32 %v3201_v9, %v727_v42  ;;  %v3451_v42 = vld [vmem:[%s4293_s1 + $0x158] sm:$0xff] }
 0x12f   : > { %v885_v15 = vadd.f32 %v837_v54, %v593_v2  ;;  %v4326_v54 = vmov 0  }
 0x131   : > { %v469_v11 = vpop.permute.xlu1 %468 }
 0x132   : > { %v594_v45 = vmul.f32 %v3198_v5, %v469_v11  ;;  %v3457_v11 = vld [vmem:[%s4293_s1 + $0x160] sm:$0xff] }
 0x136   : > { %v731_v33 = vpop.permute.xlu1 %730 }
 0x137   : > { %v838_v61 = vmul.f32 %v3201_v9, %v731_v33  ;;  %v3464_v33 = vld [vmem:[%s4293_s1 + $0x168] sm:$0xff] }
 0x139   : > { %v886_v41 = vadd.f32 %v838_v61, %v594_v45 }
 0x13b   : > { %v1019_v43 = vpop.permute.xlu1 %1018  ;;  %v1178_v13 = vadd.f32 %v1130_v10, %v886_v41 }
 0x13c   : > { %v1129_v21 = vmul.f32 %v3206_v46, %v1019_v43 }
 0x13d   : > { %v3345_v39 = vadd.f32 %v1422_v38, %v1178_v13 }
 0x13e   : > { %v1177_v26 = vadd.f32 %v1129_v21, %v885_v15 }
 0x13f   : > { %v1529_v23 = vsel %vm1489_vm1, %v3345_v39, -inf }
 0x140   : > { %v474_v31 = vpop.permute.xlu1 %473  ;;  %1530 = vmax.xlane.f32.xlu0 %v1529_v23  ;;  %v3351_v49 = vadd.f32 %v1421_v47, %v1177_v26 }
 0x141   : > { %v595_v59 = vmul.f32 %v3198_v5, %v474_v31 }
 0x142   : > { %v1526_v62 = vsel %vm1489_vm1, %v3351_v49, -inf }
 0x143   : > { %1527 = vmax.xlane.f32.xlu1 %v1526_v62 }
 0x145   : > { %v735_v22 = vpop.permute.xlu1 %734 }
 0x146   : > { %v839_v16 = vmul.f32 %v3201_v9, %v735_v22  ;;  %v1132_v22 = vmul.f32 %v3206_v46, %v3192_v32 }
 0x148   : > { %v887_v48 = vadd.f32 %v839_v16, %v595_v59 }
 0x14a   : > { %v3355_v1 = vpop.permute.xlu1 %478 }
 0x14f   : > { %v1027_v44 = vpop.permute.xlu1 %1026 }
 0x150   : > { %v1131_v40 = vmul.f32 %v3206_v46, %v1027_v44 }
 0x152   : > { %v1179_v4 = vadd.f32 %v1131_v40, %v887_v48 }
 0x154   : > { %v1319_v50 = vpop.permute.xlu1 %1318 }
 0x155   : > { %v1423_v25 = vmul.f32 %v3219_v52, %v1319_v50 }
 0x157   : > { %v3361_v51 = vadd.f32 %v1423_v25, %v1179_v4 }
 0x158   : > { %v1323_v45 = vpop.permute.xlu1 %1322 }
 0x159   : > { %v1532_v8 = vsel %vm1489_vm1, %v3361_v51, -inf  ;;  %v1424_v44 = vmul.f32 %v3219_v52, %v1323_v45  ;;  %v3525_v45 = vld [vmem:[%s4293_s1 + $0x170] sm:$0xff] }
 0x15a   : > { %1533 = vmax.xlane.f32.xlu1 %v1532_v8  ;;  %v4327_v8 = vmov 3  }
 0x16b   : > { %738 = vperm.xlu1 %2712, %v3078_v19   ;;  %v3384_v19 = vld [vmem:[%s4293_s1 + $0x118] sm:$0xff] }
 0x16f   : > { %742 = vperm.xlu1 %2712, %v3369_v20  }
 0x173   : > { %746 = vperm.xlu1 %2712, %v3375_v27  }
 0x177   : > { %2713 = vset.pattern.permute.xlu1 %v4304_v7 }
 0x178   : > { %1034 = vperm.xlu1 %2713, %v3369_v20  }
 0x17c   : > { %1038 = vperm.xlu1 %2713, %v3375_v27  }
 0x180   : > { %2714 = vset.pattern.permute.xlu1 %v4325_v60 }
 0x181   : > { %754 = vperm.xlu1 %2714, %v3384_v19  }
 0x185   : > { %2715 = vset.pattern.permute.xlu1 %v4304_v7 }
 0x186   : > { %1042 = vperm.xlu1 %2715, %v3391_v35  }
 0x18a   : > { %2716 = vset.pattern.permute.xlu1 %v4325_v60 }
 0x18b   : > { %758 = vperm.xlu1 %2716, %v3398_v29  }
 0x18f   : > { %2717 = vset.pattern.permute.xlu1 %v4304_v7 }
 0x190   : > { %1050 = vperm.xlu1 %2717, %v3398_v29  }
 0x193   : > { %v1492_v41 = vpop.xlane.xlu0 %1491 }
 0x194   : > { %1054 = vperm.xlu1 %2717, %v3407_v55   ;;  %v1495_v61 = vpop.xlane.xlu1 %1494  ;;  %v1538_v2 = vsub.f32 %v3252_v6, %v1492_v41  ;;  %v596_v6 = vmul.f32 %v3198_v5, %v3355_v1 }
 0x196   : > { %v1554_v43 = vmul.f32 1.442695, %v1538_v2 }
 0x198   : > { %2718 = vset.pattern.permute.xlu1 %v4325_v60  ;;  %v3470_v10 = vpop.xlane.xlu1 %1503  ;;  %2772 = vpow2.f32 %v1554_v43  ;;  %v284_v43 = vld [vmem:[%s4293_s1 + $0x178] sm:$0xff] }
 0x199   : > { %766 = vperm.xlu1 %2718, %v3413_v3  }
 0x19c   : > { %v3473_v38 = vpop.xlane.xlu1 %1509 }
 0x19d   : > { %770 = vperm.xlu1 %2718, %v3420_v63  }
 0x1a0   : > { %v3475_v13 = vpop.xlane.xlu1 %1515 }
 0x1a1   : > { %2719 = vset.pattern.permute.xlu1 %v4304_v7 }
 0x1a2   : > { %1062 = vperm.xlu1 %2719, %v3420_v63   ;;  %v3483_v26 = vpop.eup %2772 }
 0x1a3   : > { %v1586_v31 = vsel %vm1489_vm1, %v3483_v26, 0.0 }
 0x1a6   : > { %2720 = vset.pattern.permute.xlu1 %v4325_v60 }
 0x1a7   : > { %778 = vperm.xlu1 %2720, %v3428_v18  }
 0x1ab   : > { %2721 = vset.pattern.permute.xlu1 %v4304_v7 }
 0x1ac   : > { %1066 = vperm.xlu1 %2721, %v3435_v12  }
 0x1b0   : > { %2722 = vset.pattern.permute.xlu1 %v4325_v60 }
 0x1b1   : > { %782 = vperm.xlu1 %2722, %v3442_v56  }
 0x1b5   : > { %2724 = vset.pattern.permute.xlu1 %v4304_v7 }
 0x1b6   : > { %1074 = vperm.xlu1 %2724, %v3442_v56  }
 0x1b7   : > { %v3477_v15 = vpop.xlane.xlu1 %1521 }
 0x1ba   : > { %1078 = vperm.xlu1 %2724, %v3451_v42  }
 0x1be   : > { %2725 = vset.pattern.permute.xlu1 %v4325_v60 }
 0x1bf   : > { %790 = vperm.xlu1 %2725, %v3457_v11  }
 0x1c3   : > { %794 = vperm.xlu1 %2725, %v3464_v33  }
 0x1c7   : > { %2726 = vset.pattern.permute.xlu1 %v4304_v7 }
 0x1c8   : > { %1086 = vperm.xlu1 %2726, %v3464_v33  }
 0x1cc   : > { %2727 = vset.pattern.permute.xlu1 %v4326_v54 }
 0x1d0   : > { %v3479_v21 = vpop.xlane.xlu1 %1527 }
 0x1e7   : > { %v3481_v47 = vpop.xlane.xlu1 %1533 }
 0x1eb   : > { %v739_v23 = vpop.permute.xlu1 %738 }
 0x1ec   : > { %v840_v62 = vmul.f32 %v3201_v9, %v739_v23  ;;  %1587 = vadd.xlane.f32.xlu1 %v1586_v31  ;;  %v1539_v31 = vsub.f32 %v3257_v24, %v1495_v61 }
 0x1ee   : > { %v888_v16 = vadd.f32 %v840_v62, %v596_v6  ;;  %v1556_v62 = vmul.f32 1.442695, %v1539_v31 }
 0x1ef   : > { %v3499_v1 = vpop.permute.xlu1 %742 }
 0x1f0   : > { %v1180_v59 = vadd.f32 %v1132_v22, %v888_v16  ;;  %v1498_v22 = vpop.xlane.xlu0 %1497  ;;  %2774 = vpow2.f32 %v1556_v62 }
 0x1f1   : > { %v1540_v16 = vsub.f32 %v3261_v30, %v1498_v22 }
 0x1f2   : > { %v3493_v40 = vadd.f32 %v1424_v44, %v1180_v59 }
 0x1f3   : > { %v3502_v50 = vpop.permute.xlu1 %746  ;;  %v1558_v59 = vmul.f32 1.442695, %v1540_v16 }
 0x1f4   : > { %v1535_v48 = vsel %vm1489_vm1, %v3493_v40, -inf }
 0x1f5   : > { %1536 = vmax.xlane.f32.xlu0 %v1535_v48  ;;  %2776 = vpow2.f32 %v1558_v59 }
 0x1f7   : > { %v3507_v32 = vpop.permute.xlu1 %1034 }
 0x1fa   : > { %v3552_v7 = vpop.eup %2774 }
 0x1fb   : > { %v3512_v4 = vpop.permute.xlu1 %1038  ;;  %4328 = vst [vmem:[#allocation6_spill] sm:$0xff] %v3552_v7  ;;  %v1589_v24 = vsel %vm1489_vm1, %v3552_v7, 0.0 }
 0x1fd   : > { %483 = vperm.xlu1 %2727, %v3369_v20  }
 0x1ff   : > { %v3558_v61 = vpop.eup %2776 }
 0x200   : > { %v3517_v25 = vpop.permute.xlu1 %754  ;;  %4329 = vst [vmem:[#allocation7_spill] sm:$0xff] %v3558_v61  ;;  %v1592_v30 = vsel %vm1489_vm1, %v3558_v61, 0.0 }
 0x201   : > { %493 = vperm.xlu1 %2727, %v3391_v35  }
 0x205   : > { %498 = vperm.xlu1 %2727, %v3384_v19   ;;  %v3528_v41 = vpop.permute.xlu1 %1042 }
 0x209   : > { %508 = vperm.xlu1 %2727, %v3407_v55  }
 0x20a   : > { %v3534_v2 = vpop.permute.xlu1 %758 }
 0x20b   : > { %750 = vperm.xlu0 %2710, %v3391_v35  }
 0x20d   : > { %513 = vperm.xlu1 %2727, %v3413_v3  }
 0x20f   : > { %762 = vperm.xlu0 %2710, %v3407_v55   ;;  %v3541_v23 = vpop.permute.xlu1 %1050 }
 0x211   : > { %523 = vperm.xlu1 %2727, %v3435_v12  }
 0x213   : > { %774 = vperm.xlu0 %2710, %v3435_v12   ;;  %v3545_v6 = vpop.permute.xlu1 %1054 }
 0x215   : > { %528 = vperm.xlu1 %2727, %v3428_v18  }
 0x217   : > { %786 = vperm.xlu0 %2710, %v3451_v42  }
 0x218   : > { %v3548_v44 = vpop.permute.xlu1 %766 }
 0x219   : > { %538 = vperm.xlu1 %2727, %v3451_v42  }
 0x21b   : > { %2723 = vset.pattern.permute.xlu0 %v4327_v8 }
 0x21c   : > { %1342 = vperm.xlu0 %2723, %v3398_v29   ;;  %v3550_v48 = vpop.permute.xlu1 %770 }
 0x21d   : > { %543 = vperm.xlu1 %2727, %v3457_v11  }
 0x220   : > { %1354 = vperm.xlu0 %2723, %v3420_v63  }
 0x221   : > { %553 = vperm.xlu1 %2727, %v3525_v45   ;;  %v3554_v58 = vpop.permute.xlu1 %1062 }
 0x224   : > { %1366 = vperm.xlu0 %2723, %v3442_v56  }
 0x225   : > { %2730 = vset.pattern.permute.xlu1 %v4325_v60 }
 0x226   : > { %798 = vperm.xlu1 %2730, %v3525_v45   ;;  %v3560_v31 = vpop.permute.xlu1 %778 }
 0x228   : > { %1378 = vperm.xlu0 %2723, %v3464_v33  }
 0x22a   : > { %802 = vperm.xlu1 %2730, %v284_v43  }
 0x22b   : > { %v3564_v62 = vpop.permute.xlu1 %1066 }
 0x22c   : > { %2728 = vset.pattern.permute.xlu0 %v4326_v54 }
 0x22e   : > { %2731 = vset.pattern.permute.xlu1 %v4327_v8 }
 0x230   : > { %v3566_v22 = vpop.permute.xlu1 %782 }
 0x235   : > { %v3568_v16 = vpop.permute.xlu1 %1074 }
 0x239   : > { %v3573_v59 = vpop.permute.xlu1 %1078 }
 0x247   : > { %1590 = vadd.xlane.f32.xlu0 %v1589_v24  ;;  %v3578_v24 = vpop.permute.xlu1 %790 }
 0x24e   : > { %1593 = vadd.xlane.f32.xlu1 %v1592_v30  ;;  %v3583_v30 = vpop.permute.xlu1 %794 }
 0x25d   : > { %488 = vperm.xlu0 %2728, %v3375_v27  }
 0x25f   : > { %1326 = vperm.xlu1 %2731, %v3369_v20   ;;  %v3587_v20 = vpop.permute.xlu1 %1086 }
 0x261   : > { %503 = vperm.xlu0 %2728, %v3398_v29   ;;  %v1501_v29 = vpop.xlane.xlu0 %1500 }
 0x263   : > { %1330 = vperm.xlu1 %2731, %v3375_v27   ;;  %v4330_v27 = vmov 2  }
 0x265   : > { %518 = vperm.xlu0 %2728, %v3420_v63   ;;  %v1507_v63 = vpop.xlane.xlu0 %1506 }
 0x267   : > { %1334 = vperm.xlu1 %2731, %v3391_v35  }
 0x269   : > { %533 = vperm.xlu0 %2728, %v3442_v56  }
 0x26b   : > { %1338 = vperm.xlu1 %2731, %v3384_v19  }
 0x26d   : > { %548 = vperm.xlu0 %2728, %v3464_v33   ;;  %v1543_v33 = vsub.f32 %v3293_v0, %v1507_v63 }
 0x26f   : > { %1346 = vperm.xlu1 %2731, %v3407_v55  }
 0x271   : > { %558 = vperm.xlu0 %2728, %v284_v43  }
 0x273   : > { %1350 = vperm.xlu1 %2731, %v3413_v3  }
 0x275   : > { %2729 = vset.pattern.permute.xlu0 %v4330_v27 }
 0x276   : > { %1046 = vperm.xlu0 %2729, %v3384_v19  }
 0x277   : > { %1358 = vperm.xlu1 %2731, %v3435_v12   ;;  %v1541_v12 = vsub.f32 %v3277_v57, %v1501_v29 }
 0x279   : > { %v1588_v35 = vpop.xlane.xlu1 %1587 }
 0x27a   : > { %2778 = vrcp.f32 %v1588_v35  ;;  %1058 = vperm.xlu0 %2729, %v3413_v3   ;;  %v1513_v3 = vpop.xlane.xlu0 %1512 }
 0x27b   : > { %1362 = vperm.xlu1 %2731, %v3428_v18  }
 0x27d   : > { %v3604_v56 = vpop.permute.xlu1 %483 }
 0x27e   : > { %1070 = vperm.xlu0 %2729, %v3428_v18   ;;  %v1519_v18 = vpop.xlane.xlu0 %1518 }
 0x27f   : > { %1370 = vperm.xlu1 %2731, %v3451_v42  }
 0x282   : > { %1082 = vperm.xlu0 %2729, %v3457_v11   ;;  %v1525_v42 = vpop.xlane.xlu0 %1524 }
 0x283   : > { %1374 = vperm.xlu1 %2731, %v3457_v11   ;;  %v1560_v11 = vmul.f32 1.442695, %v1541_v12  ;;  %v1545_v12 = vsub.f32 %v3307_v34, %v1513_v3 }
 0x284   : > { %v2779_v55 = vpop.eup %2778 }
 0x285   : > { %v1650_v19 = vmul.f32 %v2779_v55, %v3483_v26  ;;  %v1542_v26 = vsub.f32 %v3270_v53, %v3470_v10  ;;  %2780 = vpow2.f32 %v1560_v11  ;;  %v3611_v55 = vpop.permute.xlu1 %493 }
 0x286   : > { %1090 = vperm.xlu0 %2729, %v3525_v45   ;;  %v1531_v35 = vpop.xlane.xlu0 %1530 }
 0x287   : > { %2404 = vmatprep.mubr.msk.f32.mxu0 %vm1489_vm1, %v1650_v19  ;;  %1382 = vperm.xlu1 %2731, %v3525_v45   ;;  %v1544_v45 = vsub.f32 %v3289_v17, %v3473_v38  ;;  %v1562_v19 = vmul.f32 1.442695, %v1542_v26  ;;  %v1551_v57 = vsub.f32 %v3345_v39, %v1531_v35  ;;  %v1546_v17 = vsub.f32 %v3295_v14, %v3475_v13 }
 0x288   : > { %v1568_v38 = vmul.f32 1.442695, %v1545_v12  ;;  %v1548_v26 = vsub.f32 %v3332_v28, %v3477_v15 }
 0x289   : > { %v1566_v61 = vmul.f32 1.442695, %v1544_v45  ;;  %v1580_v0 = vmul.f32 1.442695, %v1551_v57  ;;  %v3616_v10 = vpop.permute.xlu1 %498  ;;  %v1570_v11 = vmul.f32 1.442695, %v1546_v17 }
 0x28a   : > { %1094 = vperm.xlu0 %2729, %v284_v43   ;;  %v1537_v29 = vpop.xlane.xlu0 %1536  ;;  %v1574_v57 = vmul.f32 1.442695, %v1548_v26 }
 0x28b   : > { %1386 = vperm.xlu1 %2731, %v284_v43   ;;  %v1564_v43 = vmul.f32 1.442695, %v1543_v33  ;;  %v1553_v53 = vsub.f32 %v3493_v40, %v1537_v29  ;;  %v1547_v33 = vsub.f32 %v3313_v37, %v1519_v18 }
 0x28d   : > { %2782 = vpow2.f32 %v1564_v43  ;;  %v1584_v39 = vmul.f32 1.442695, %v1553_v53  ;;  %v3623_v34 = vpop.permute.xlu1 %508  ;;  %v1572_v13 = vmul.f32 1.442695, %v1547_v33 }
 0x28e   : > { %2784 = vpow2.f32 %v1562_v19  ;;  %v1549_v19 = vsub.f32 %v3326_v36, %v1525_v42  ;;  %v1550_v36 = vsub.f32 %v3351_v49, %v3479_v21 }
 0x28f   : > { %2732 = vset.pattern.permute.xlu1 %v4326_v54  ;;  %2786 = vpow2.f32 %v1566_v61  ;;  %v3620_v63 = vpop.eup %2780  ;;  %v3629_v61 = vpop.permute.xlu0 %750 }
 0x290   : > { %4331 = vst [vmem:[#allocation8_spill] sm:$0xff] %v3620_v63  ;;  %2788 = vpow2.f32 %v1580_v0  ;;  %v1595_v40 = vsel %vm1489_vm1, %v3620_v63, 0.0  ;;  %v1576_v53 = vmul.f32 1.442695, %v1549_v19  ;;  %v1578_v33 = vmul.f32 1.442695, %v1550_v36 }
 0x291   : > { %2790 = vpow2.f32 %v1568_v38  ;;  %v3639_v35 = vpop.permute.xlu1 %513 }
 0x292   : > { %2792 = vpow2.f32 %v1584_v39 }
 0x293   : > { %2794 = vpow2.f32 %v1570_v11  ;;  %v3646_v29 = vpop.permute.xlu0 %762 }
 0x294   : > { %2796 = vpow2.f32 %v1572_v13 }
 0x295   : > { %2798 = vpow2.f32 %v1574_v57  ;;  %v3658_v42 = vpop.permute.xlu1 %523 }
 0x296   : > { %2800 = vpow2.f32 %v1576_v53 }
 0x297   : > { %v3627_v3 = vpop.eup %2782  ;;  %v3664_v39 = vpop.permute.xlu0 %774  ;;  %2802 = vpow2.f32 %v1578_v33 }
 0x298   : > { %4332 = vst [vmem:[#allocation9_spill] sm:$0xff] %v3627_v3  ;;  %v3631_v14 = vpop.eup %2784  ;;  %v1601_v37 = vsel %vm1489_vm1, %v3627_v3, 0.0 }
 0x299   : > { %4333 = vst [vmem:[#allocation10_spill] sm:$0xff] %v3631_v14  ;;  %v3637_v18 = vpop.eup %2786  ;;  %v1598_v45 = vsel %vm1489_vm1, %v3631_v14, 0.0  ;;  %v3674_v13 = vpop.permute.xlu1 %528  ;;  %v3749_v14 = vld [vmem:[%s4293_s1 + $0x18] sm:$0xff] }
 0x29a   : > { %4334 = vst [vmem:[#allocation11_spill] sm:$0xff] %v3637_v18  ;;  %v3643_v43 = vpop.eup %2788  ;;  %v1604_v28 = vsel %vm1489_vm1, %v3637_v18, 0.0 }
 0x29b   : > { %4335 = vst [vmem:[#allocation12_spill] sm:$0xff] %v3643_v43  ;;  %v3650_v15 = vpop.eup %2790  ;;  %v1625_v12 = vsel %vm1489_vm1, %v3643_v43, 0.0 }
 0x29c   : > { %4336 = vst [vmem:[#allocation13_spill] sm:$0xff] %v3650_v15  ;;  %v3654_v0 = vpop.eup %2792  ;;  %v1607_v17 = vsel %vm1489_vm1, %v3650_v15, 0.0 }
 0x29d   : > { %4337 = vst [vmem:[#allocation14_spill] sm:$0xff] %v3654_v0  ;;  %v3662_v38 = vpop.eup %2794  ;;  %v1631_v11 = vsel %vm1489_vm1, %v3654_v0, 0.0 }
 0x29e   : > { %4338 = vst [vmem:[#allocation15_spill] sm:$0xff] %v3662_v38  ;;  %v1610_v49 = vsel %vm1489_vm1, %v3662_v38, 0.0  ;;  %v3672_v21 = vpop.eup %2796  ;;  %v842_v38 = vmul.f32 %v3201_v9, %v3502_v50 }
 0x29f   : > { %4339 = vst [vmem:[#allocation16_spill] sm:$0xff] %v3672_v21  ;;  %v3680_v19 = vpop.eup %2798 }
 0x2a0   : > { %4340 = vst [vmem:[#allocation17_spill] sm:$0xff] %v3680_v19  ;;  %v3686_v57 = vpop.eup %2800 }
 0x2a1   : > { %4341 = vst [vmem:[#allocation18_spill] sm:$0xff] %v3686_v57  ;;  %v3692_v53 = vpop.eup %2802 }
 0x2a2   : > { %4342 = vst [vmem:[#allocation19_spill] sm:$0xff] %v3692_v53  ;;  %v1622_v33 = vsel %vm1489_vm1, %v3692_v53, 0.0 }
 0x2a9   : > { %1596 = vadd.xlane.f32.xlu0 %v1595_v40  ;;  %v1552_v40 = vsub.f32 %v3361_v51, %v3481_v47  ;;  %v3682_v51 = vpop.permute.xlu1 %538  ;;  %v1616_v47 = vsel %vm1489_vm1, %v3680_v19, 0.0 }
 0x2ab   : > { %v1582_v26 = vmul.f32 1.442695, %v1552_v40 }
 0x2ad   : > { %1602 = vadd.xlane.f32.xlu0 %v1601_v37  ;;  %v3676_v37 = vpop.permute.xlu0 %786  ;;  %2804 = vpow2.f32 %v1582_v26  ;;  %v3694_v36 = vpop.permute.xlu1 %543 }
 0x2af   : > { %1599 = vadd.xlane.f32.xlu1 %v1598_v45  ;;  %v1613_v45 = vsel %vm1489_vm1, %v3672_v21, 0.0  ;;  %v841_v21 = vmul.f32 %v3201_v9, %v3499_v1  ;;  %v1134_v1 = vmul.f32 %v3206_v46, %v3512_v4 }
 0x2b1   : > { %1605 = vadd.xlane.f32.xlu0 %v1604_v28  ;;  %v3688_v28 = vpop.permute.xlu0 %1342  ;;  %v3713_v26 = vpop.permute.xlu1 %553 }
 0x2b2   : > { %4344 = vst [vmem:[#allocation21_spill] sm:$0xff] %v3713_v26 }
 0x2b3   : > { %1626 = vadd.xlane.f32.xlu1 %v1625_v12  ;;  %v1619_v12 = vsel %vm1489_vm1, %v3686_v57, 0.0  ;;  %v239_v57 = vld [vmem:[%s4293_s1 + $0x10] sm:$0xff] }
 0x2b5   : > { %1608 = vadd.xlane.f32.xlu0 %v1607_v17  ;;  %v3699_v17 = vld [vmem:[%s4293_s1 + $0x8] sm:$0xff] }
 0x2b7   : > { %1632 = vadd.xlane.f32.xlu1 %v1631_v11  ;;  %v3701_v11 = vpop.permute.xlu0 %1354  ;;  %v3706_v40 = vpop.eup %2804 }
 0x2b8   : > { %4343 = vst [vmem:[#allocation20_spill] sm:$0xff] %v3706_v40 }
 0x2b9   : > { %1611 = vadd.xlane.f32.xlu0 %v1610_v49  ;;  %v3711_v49 = vld [vmem:[%s4293_s1] sm:$0xff] }
 0x2bd   : > { %1614 = vadd.xlane.f32.xlu0 %v1613_v45  ;;  %v1628_v45 = vsel %vm1489_vm1, %v3706_v40, 0.0  ;;  %v597_v40 = vmul.f32 %v3198_v5, %v3604_v56 }
 0x2bf   : > { %v889_v18 = vadd.f32 %v841_v21, %v597_v40  ;;  %v3761_v40 = vld [vmem:[%s4293_s1 + $0x28] sm:$0xff] }
 0x2c1   : > { %1617 = vadd.xlane.f32.xlu0 %v1616_v47  ;;  %v3719_v47 = vpop.permute.xlu0 %1366 }
 0x2c5   : > { %1620 = vadd.xlane.f32.xlu0 %v1619_v12  ;;  %v3721_v12 = vpop.permute.xlu1 %798 }
 0x2c8   : > { %328 = vperm.xlu1 %2732, %v3699_v17  }
 0x2c9   : > { %1623 = vadd.xlane.f32.xlu0 %v1622_v33  ;;  %v3724_v33 = vpop.permute.xlu0 %1378  ;;  %v3728_v0 = vpop.permute.xlu1 %802 }
 0x2ca   : > { %4345 = vst [vmem:[#allocation22_spill] sm:$0xff] %v3728_v0 }
 0x2cc   : > { %2733 = vset.pattern.permute.xlu1 %v4325_v60 }
 0x2cd   : > { %1629 = vadd.xlane.f32.xlu0 %v1628_v45  ;;  %614 = vperm.xlu1 %2733, %v3711_v49  }
 0x2d1   : > { %618 = vperm.xlu1 %2733, %v3699_v17  }
 0x2d4   : > { %v3730_v43 = vpop.xlane.xlu0 %1590 }
 0x2d5   : > { %2734 = vset.pattern.permute.xlu1 %v4330_v27  ;;  %4346 = vst [vmem:[#allocation23_spill] sm:$0xff] %v3730_v43 }
 0x2d6   : > { %906 = vperm.xlu1 %2734, %v3711_v49  }
 0x2da   : > { %910 = vperm.xlu1 %2734, %v3699_v17  }
 0x2db   : > { %v3733_v45 = vpop.xlane.xlu1 %1593 }
 0x2dc   : > { %4347 = vst [vmem:[#allocation24_spill] sm:$0xff] %v3733_v45  ;;  %v489_v53 = vpop.permute.xlu0 %488 }
 0x2dd   : > { %v598_v19 = vmul.f32 %v3198_v5, %v489_v53  ;;  %v1133_v53 = vmul.f32 %v3206_v46, %v3507_v32 }
 0x2de   : > { %2735 = vset.pattern.permute.xlu1 %v4326_v54 }
 0x2df   : > { %v1327_v15 = vpop.permute.xlu1 %1326  ;;  %333 = vperm.xlu1 %2735, %v239_v57   ;;  %v890_v3 = vadd.f32 %v842_v38, %v598_v19  ;;  %v1181_v7 = vadd.f32 %v1133_v53, %v889_v18 }
 0x2e0   : > { %v504_v56 = vpop.permute.xlu0 %503  ;;  %v1425_v50 = vmul.f32 %v3219_v52, %v1327_v15  ;;  %v843_v15 = vmul.f32 %v3201_v9, %v3629_v61  ;;  %v3796_v61 = vld [vmem:[%s4293_s1 + $0x40] sm:$0xff] }
 0x2e1   : > { %v1182_v21 = vadd.f32 %v1134_v1, %v890_v3  ;;  %v601_v1 = vmul.f32 %v3198_v5, %v504_v56  ;;  %v600_v56 = vmul.f32 %v3198_v5, %v3616_v10  ;;  %v847_v10 = vmul.f32 %v3201_v9, %v3548_v44 }
 0x2e2   : > { %v1473_v32 = vadd.f32 %v1425_v50, %v1181_v7 }
 0x2e3   : > { %v1331_v63 = vpop.permute.xlu1 %1330  ;;  %914 = vperm.xlu0 %2729, %v239_v57   ;;  %338 = vperm.xlu1 %2735, %v3749_v14  }
 0x2e4   : > { %v1426_v38 = vmul.f32 %v3219_v52, %v1331_v63  ;;  %v519_v19 = vpop.permute.xlu0 %518 }
 0x2e6   : > { %v1474_v45 = vadd.f32 %v1426_v38, %v1182_v21  ;;  %v602_v21 = vmul.f32 %v3198_v5, %v3623_v34  ;;  %v1135_v34 = vmul.f32 %v3206_v46, %v3528_v41 }
 0x2e7   : > { %v1335_v43 = vpop.permute.xlu1 %1334  ;;  %926 = vperm.xlu0 %2729, %v3761_v40   ;;  %2736 = vset.pattern.permute.xlu1 %v4325_v60 }
 0x2e8   : > { %622 = vperm.xlu1 %2736, %v239_v57   ;;  %v534_v63 = vpop.permute.xlu0 %533  ;;  %v2519_v3 = vpack.c.bf16 %v1474_v45, %v1473_v32  ;;  %v846_v45 = vmul.f32 %v3201_v9, %v3646_v29  ;;  %v845_v29 = vmul.f32 %v3201_v9, %v3534_v2  ;;  %v1138_v2 = vmul.f32 %v3206_v46, %v3545_v6 }
 0x2ea   : > { %2521 = vmatprep.subr.msk.bf16.mxu0 %vm3767_vm2, %v2519_v3  ;;  %v894_v32 = vadd.f32 %v846_v45, %v602_v21  ;;  %v893_v26 = vadd.f32 %v845_v29, %v601_v1  ;;  %v607_v1 = vmul.f32 %v3198_v5, %v534_v63 }
 0x2eb   : > { %v1339_v18 = vpop.permute.xlu1 %1338  ;;  %2743 = vset.pattern.permute.xlu0 %v4327_v8  ;;  %2524 = vmatpush3.bf16.xpose.msk.msra.mxu0 %vm3767_vm2, %v2519_v3 }
 0x2ec   : > { %1206 = vperm.xlu0 %2743, %v239_v57   ;;  %2737 = vset.pattern.permute.xlu1 %v4327_v8  ;;  %v3777_v7 = vpop.permute.xlu0 %548  ;;  %v599_v57 = vmul.f32 %v3198_v5, %v3611_v55  ;;  %v844_v55 = vmul.f32 %v3201_v9, %v3517_v25  ;;  %v1427_v25 = vmul.f32 %v3219_v52, %v1335_v43 }
 0x2ed   : > { %1198 = vperm.xlu1 %2737, %v3711_v49   ;;  %v608_v43 = vmul.f32 %v3198_v5, %v3682_v51  ;;  %v1186_v21 = vadd.f32 %v1138_v2, %v894_v32  ;;  %v1428_v63 = vmul.f32 %v3219_v52, %v1339_v18  ;;  %v852_v51 = vmul.f32 %v3201_v9, %v3676_v37 }
 0x2ee   : > { %v891_v38 = vadd.f32 %v843_v15, %v599_v57  ;;  %v851_v15 = vmul.f32 %v3201_v9, %v3566_v22  ;;  %v892_v45 = vadd.f32 %v844_v55, %v600_v56  ;;  %v603_v22 = vmul.f32 %v3198_v5, %v3639_v35  ;;  %v3840_v55 = vld [vmem:[%s4293_s1 + $0x20] sm:$0xff] }
 0x2ef   : > { %v1347_v53 = vpop.permute.xlu1 %1346  ;;  %v604_v56 = vmul.f32 %v3198_v5, %v519_v19  ;;  %v848_v35 = vmul.f32 %v3201_v9, %v3550_v48  ;;  %v1143_v2 = vmul.f32 %v3206_v46, %v3568_v16 }
 0x2f0   : > { %1218 = vperm.xlu0 %2743, %v3761_v40   ;;  %v3786_v50 = vpop.permute.xlu0 %558  ;;  %v1430_v6 = vmul.f32 %v3219_v52, %v1347_v53  ;;  %v1183_v57 = vadd.f32 %v1135_v34, %v891_v38  ;;  %v899_v18 = vadd.f32 %v851_v15, %v607_v1  ;;  %v895_v37 = vadd.f32 %v847_v10, %v603_v22 }
 0x2f1   : > { %1202 = vperm.xlu1 %2737, %v3699_v17   ;;  %v1137_v17 = vmul.f32 %v3206_v46, %v3541_v23  ;;  %v3822_v23 = vld [vmem:[%s4293_s1 + $0x58] sm:$0xff]  ;;  %v1144_v15 = vmul.f32 %v3206_v46, %v3573_v59  ;;  %v1435_v10 = vmul.f32 %v3219_v52, %v3719_v47  ;;  %v605_v47 = vmul.f32 %v3198_v5, %v3658_v42 }
 0x2f2   : > { %v1475_v19 = vadd.f32 %v1427_v25, %v1183_v57  ;;  %v1478_v32 = vadd.f32 %v1430_v6, %v1186_v21  ;;  %v1140_v25 = vmul.f32 %v3206_v46, %v3554_v58  ;;  %v1191_v1 = vadd.f32 %v1143_v2, %v899_v18 }
 0x2f3   : > { %v3802_v3 = vpop.permute.xlu1 %1350  ;;  %v1185_v0 = vadd.f32 %v1137_v17, %v893_v26  ;;  %v1429_v26 = vmul.f32 %v3219_v52, %v3688_v28  ;;  %v849_v21 = vmul.f32 %v3201_v9, %v3664_v39 }
 0x2f4   : > { %1230 = vperm.xlu0 %2743, %v3796_v61  }
 0x2f5   : > { %2738 = vset.pattern.permute.xlu1 %v4330_v27  ;;  %v1047_v41 = vpop.permute.xlu0 %1046 }
 0x2f6   : > { %v1136_v44 = vmul.f32 %v3206_v46, %v1047_v41  ;;  %918 = vperm.xlu1 %2738, %v3749_v14   ;;  %v900_v41 = vadd.f32 %v852_v51, %v608_v43 }
 0x2f7   : > { %v3832_v29 = vpop.permute.xlu1 %1358 }
 0x2f8   : > { %v1184_v53 = vadd.f32 %v1136_v44, %v892_v45  ;;  %1242 = vperm.xlu0 %2743, %v3822_v23   ;;  %v1477_v45 = vadd.f32 %v1429_v26, %v1185_v0  ;;  %v896_v44 = vadd.f32 %v848_v35, %v604_v56  ;;  %v606_v0 = vmul.f32 %v3198_v5, %v3674_v13 }
 0x2f9   : > { %v1059_v38 = vpop.permute.xlu0 %1058  ;;  %v1192_v59 = vadd.f32 %v1144_v15, %v900_v41  ;;  %v850_v13 = vmul.f32 %v3201_v9, %v3560_v31  ;;  %v1432_v56 = vmul.f32 %v3219_v52, %v3701_v11  ;;  %v897_v31 = vadd.f32 %v849_v21, %v605_v47 }
 0x2fa   : > { %v1476_v34 = vadd.f32 %v1428_v63, %v1184_v53  ;;  %v1139_v17 = vmul.f32 %v3206_v46, %v1059_v38  ;;  %2739 = vset.pattern.permute.xlu1 %v4326_v54  ;;  %v2531_v16 = vpack.c.bf16 %v1478_v32, %v1477_v45  ;;  %v1188_v58 = vadd.f32 %v1140_v25, %v896_v44  ;;  %v3933_v25 = vld [vmem:[%s4293_s1 + $0x38] sm:$0xff] }
 0x2fb   : > { %v1363_v48 = vpop.permute.xlu1 %1362  ;;  %343 = vperm.xlu1 %2739, %v3840_v55   ;;  %v898_v51 = vadd.f32 %v850_v13, %v606_v0  ;;  %v1141_v11 = vmul.f32 %v3206_v46, %v3564_v62  ;;  %v1433_v38 = vmul.f32 %v3219_v52, %v3832_v29  ;;  %v3903_v62 = vld [vmem:[%s4293_s1 + $0x70] sm:$0xff]  ;;  %v609_v41 = vmul.f32 %v3198_v5, %v3694_v36 }
 0x2fc   : > { %v2525_v28 = vpack.c.bf16 %v1476_v34, %v1475_v19  ;;  %2759 = vset.pattern.permute.xlu0 %v4326_v54  ;;  %v1187_v6 = vadd.f32 %v1139_v17, %v895_v37  ;;  %v1480_v26 = vadd.f32 %v1432_v56, %v1188_v58  ;;  %v1434_v18 = vmul.f32 %v3219_v52, %v1363_v48  ;;  %v3919_v37 = vld [vmem:[%s4293_s1 + $0x30] sm:$0xff] }
 0x2fd   : > { %323 = vperm.xlu0 %2759, %v3711_v49   ;;  %v1071_v22 = vpop.permute.xlu0 %1070  ;;  %v1431_v49 = vmul.f32 %v3219_v52, %v3802_v3  ;;  %v1483_v3 = vadd.f32 %v1435_v10, %v1191_v1  ;;  %v610_v48 = vmul.f32 %v3198_v5, %v3777_v7  ;;  %v853_v44 = vmul.f32 %v3201_v9, %v3578_v24 }
 0x2fe   : > { %2527 = vmatprep.subr.msk.bf16.mxu0 %vm3767_vm2, %v2525_v28  ;;  %v1142_v53 = vmul.f32 %v3206_v46, %v1071_v22  ;;  %v854_v36 = vmul.f32 %v3201_v9, %v3583_v30  ;;  %v1146_v24 = vmul.f32 %v3206_v46, %v3587_v20  ;;  %v612_v20 = vmul.f32 %v3198_v5, %v3786_v50  ;;  %v3964_v50 = vld [vmem:[%s4293_s1 + $0x60] sm:$0xff] }
 0x2ff   : > { %v1371_v43 = vpop.permute.xlu1 %1370  ;;  %2740 = vset.pattern.permute.xlu1 %v4325_v60  ;;  %2530 = vmatpush3.bf16.xpose.msk.msra.mxu0 %vm3767_vm2, %v2525_v28  ;;  %v1479_v63 = vadd.f32 %v1431_v49, %v1187_v6  ;;  %v901_v7 = vadd.f32 %v853_v44, %v609_v41  ;;  %v3945_v6 = vld [vmem:[%s4293_s1 + $0x48] sm:$0xff]  ;;  %v855_v10 = vmul.f32 %v3201_v9, %v3721_v12 }
 0x300   : > { %v1436_v57 = vmul.f32 %v3219_v52, %v1371_v43  ;;  %630 = vperm.xlu1 %2740, %v3840_v55   ;;  %2533 = vmatprep.subr.msk.bf16.mxu0 %vm3767_vm2, %v2531_v16  ;;  %v1190_v39 = vadd.f32 %v1142_v53, %v898_v51  ;;  %v902_v15 = vadd.f32 %v854_v36, %v610_v48  ;;  %v4350_v43 = vld [vmem:[#allocation22_spill] sm:$0xff]  ;;  %v4351_v12 = vld [vmem:[#allocation21_spill] sm:$0xff] }
 0x301   : > { %348 = vperm.xlu0 %2759, %v3761_v40   ;;  %v2537_v42 = vpack.c.bf16 %v1480_v26, %v1479_v63  ;;  %v1083_v34 = vpop.permute.xlu0 %1082  ;;  %v1438_v22 = vmul.f32 %v3219_v52, %v3724_v33  ;;  %v611_v13 = vmul.f32 %v3198_v5, %v4351_v12 }
 0x302   : > { %v1484_v35 = vadd.f32 %v1436_v57, %v1192_v59  ;;  %v1482_v32 = vadd.f32 %v1434_v18, %v1190_v39  ;;  %v1145_v28 = vmul.f32 %v3206_v46, %v1083_v34  ;;  %v1194_v0 = vadd.f32 %v1146_v24, %v902_v15  ;;  %v4352_v39 = vld [vmem:[#allocation23_spill] sm:$0xff]  ;;  %v4354_v18 = vld [vmem:[#allocation6_spill] sm:$0xff] }
 0x303   : > { %v1375_v2 = vpop.permute.xlu1 %1374  ;;  %v856_v59 = vmul.f32 %v3201_v9, %v4350_v43  ;;  %v903_v56 = vadd.f32 %v855_v10, %v611_v13  ;;  %2806 = vrcp.f32 %v4352_v39  ;;  %v4355_v34 = vld [vmem:[#allocation7_spill] sm:$0xff]  ;;  %v4357_v24 = vld [vmem:[#allocation10_spill] sm:$0xff] }
 0x304   : > { %v3884_v19 = vpack.c.bf16 %v1484_v35, %v1483_v3  ;;  %634 = vperm.xlu1 %2740, %v3761_v40   ;;  %v1189_v40 = vadd.f32 %v1141_v11, %v897_v31  ;;  %v1193_v30 = vadd.f32 %v1145_v28, %v901_v7  ;;  %v1486_v33 = vadd.f32 %v1438_v22, %v1194_v0  ;;  %v3978_v35 = vld [vmem:[%s4293_s1 + $0x78] sm:$0xff]  ;;  %v4025_v28 = vld [vmem:[%s4293_s1 + $0x50] sm:$0xff] }
 0x305   : > { %363 = vperm.xlu0 %2759, %v3796_v61   ;;  %v1091_v45 = vpop.permute.xlu0 %1090  ;;  %v904_v47 = vadd.f32 %v856_v59, %v612_v20  ;;  %v4359_v10 = vld [vmem:[#allocation11_spill] sm:$0xff] }
 0x306   : > { %v1481_v29 = vadd.f32 %v1433_v38, %v1189_v40  ;;  %v1147_v21 = vmul.f32 %v3206_v46, %v1091_v45  ;;  %v4356_v45 = vld [vmem:[#allocation8_spill] sm:$0xff] }
 0x307   : > { %2536 = vmatpush3.bf16.xpose.msk.msra.mxu0 %vm3767_vm2, %v2531_v16  ;;  %v1383_v1 = vpop.permute.xlu1 %1382  ;;  %v1437_v16 = vmul.f32 %v3219_v52, %v1375_v2 }
 0x308   : > { %2741 = vset.pattern.permute.xlu1 %v4327_v8  ;;  %2539 = vmatprep.subr.msk.bf16.mxu0 %vm3767_vm2, %v2537_v42  ;;  %v2543_v17 = vpack.c.bf16 %v1482_v32, %v1481_v29  ;;  %v1195_v51 = vadd.f32 %v1147_v21, %v903_v56  ;;  %v1439_v26 = vmul.f32 %v3219_v52, %v1383_v1 }
 0x309   : > { %378 = vperm.xlu0 %2759, %v3822_v23   ;;  %1210 = vperm.xlu1 %2741, %v3749_v14   ;;  %v1485_v58 = vadd.f32 %v1437_v16, %v1193_v30 }
 0x30b   : > { %v1387_v57 = vpop.permute.xlu1 %1386  ;;  %v2555_v3 = vpack.c.bf16 %v1486_v33, %v1485_v58 }
 0x30c   : > { %v1440_v53 = vmul.f32 %v3219_v52, %v1387_v57 }
 0x30d   : > { %393 = vperm.xlu0 %2759, %v3903_v62   ;;  %2742 = vset.pattern.permute.xlu1 %v4330_v27  ;;  %v2807_v11 = vpop.eup %2806 }
 0x30e   : > { %922 = vperm.xlu1 %2742, %v3840_v55   ;;  %v1651_v40 = vmul.f32 %v2807_v11, %v4354_v18  ;;  %v250_v18 = vld [vmem:[%s4293_s1 + $0x68] sm:$0xff] }
 0x30f   : > { %2542 = vmatpush3.bf16.xpose.msk.msra.mxu0 %vm3767_vm2, %v2537_v42  ;;  %v1487_v42 = vadd.f32 %v1439_v26, %v1195_v51 }
 0x310   : > { %2545 = vmatprep.subr.msk.bf16.mxu0 %vm3767_vm2, %v2543_v17 }
 0x311   : > { %2761 = vset.pattern.permute.xlu0 %v4325_v60 }
 0x312   : > { %626 = vperm.xlu0 %2761, %v3749_v14   ;;  %2744 = vset.pattern.permute.xlu1 %v4326_v54  ;;  %v1095_v14 = vpop.permute.xlu0 %1094 }
 0x313   : > { %353 = vperm.xlu1 %2744, %v3919_v37   ;;  %v1148_v49 = vmul.f32 %v3206_v46, %v1095_v14  ;;  %v4358_v14 = vld [vmem:[#allocation9_spill] sm:$0xff] }
 0x315   : > { %v1196_v63 = vadd.f32 %v1148_v49, %v904_v47  ;;  %v4360_v49 = vld [vmem:[#allocation13_spill] sm:$0xff]  ;;  %v4361_v47 = vld [vmem:[#allocation15_spill] sm:$0xff] }
 0x316   : > { %638 = vperm.xlu0 %2761, %v3919_v37  }
 0x317   : > { %358 = vperm.xlu1 %2744, %v3933_v25   ;;  %2548 = vmatpush3.bf16.xpose.msk.msra.mxu0 %vm3767_vm2, %v2543_v17  ;;  %v1488_v31 = vadd.f32 %v1440_v53, %v1196_v63  ;;  %v4362_v63 = vld [vmem:[#allocation16_spill] sm:$0xff] }
 0x318   : > { %2551 = vmatprep.subr.msk.bf16.mxu0 %vm3767_vm2, %v3884_v19 }
 0x31a   : > { %650 = vperm.xlu0 %2761, %v3945_v6  }
 0x31b   : > { %2745 = vset.pattern.permute.xlu1 %v4325_v60 }
 0x31c   : > { %642 = vperm.xlu1 %2745, %v3933_v25  }
 0x31e   : > { %662 = vperm.xlu0 %2761, %v3964_v50  }
 0x31f   : > { %2554 = vmatpush3.bf16.xpose.msk.msra.mxu0 %vm3767_vm2, %v3884_v19  ;;  %v2561_v19 = vpack.c.bf16 %v1488_v31, %v1487_v42  ;;  %v4363_v42 = vld [vmem:[#allocation17_spill] sm:$0xff] }
 0x320   : > { %2746 = vset.pattern.permute.xlu1 %v4327_v8  ;;  %2557 = vmatprep.subr.msk.bf16.mxu0 %vm3767_vm2, %v2555_v3 }
 0x321   : > { %1214 = vperm.xlu1 %2746, %v3840_v55   ;;  %v4353_v55 = vld [vmem:[#allocation24_spill] sm:$0xff] }
 0x322   : > { %674 = vperm.xlu0 %2761, %v3978_v35   ;;  %2808 = vrcp.f32 %v4353_v55  ;;  %v4364_v55 = vld [vmem:[#allocation18_spill] sm:$0xff] }
 0x325   : > { %2747 = vset.pattern.permute.xlu1 %v4330_v27 }
 0x326   : > { %2764 = vset.pattern.permute.xlu0 %v4330_v27  ;;  %930 = vperm.xlu1 %2747, %v3919_v37  }
 0x327   : > { %938 = vperm.xlu0 %2764, %v3796_v61   ;;  %2560 = vmatpush3.bf16.xpose.msk.msra.mxu0 %vm3767_vm2, %v2555_v3 }
 0x328   : > { %2563 = vmatprep.subr.msk.bf16.mxu0 %vm3767_vm2, %v2561_v19 }
 0x32a   : > { %934 = vperm.xlu1 %2747, %v3933_v25  }
 0x32b   : > { %950 = vperm.xlu0 %2764, %v3822_v23  }
 0x32c   : > { %v2809_v38 = vpop.eup %2808 }
 0x32d   : > { %v1652_v29 = vmul.f32 %v2809_v38, %v4355_v34 }
 0x32e   : > { %2748 = vset.pattern.permute.xlu1 %v4326_v54 }
 0x32f   : > { %368 = vperm.xlu1 %2748, %v3945_v6   ;;  %962 = vperm.xlu0 %2764, %v3903_v62  }
 0x330   : > { %2566 = vmatpush3.bf16.xpose.msk.msra.mxu0 %vm3767_vm2, %v2561_v19 }
 0x333   : > { %2749 = vset.pattern.permute.xlu1 %v4325_v60  ;;  %2768 = vset.pattern.permute.xlu0 %v4327_v8 }
 0x334   : > { %646 = vperm.xlu1 %2749, %v3796_v61   ;;  %1258 = vperm.xlu0 %2768, %v3978_v35   ;;  %v2836_v61 = vld [vmem:[%s4295_s3] sm:$0xf] }
 0x336   : > { %v1597_v32 = vpop.xlane.xlu0 %1596 }
 0x337   : > { %2405 = vmatmul.mubr.msk.f32.vlgmr.msra.gmra.mrb[0].mxu0 %vm1489_vm1, %v1651_v40  ;;  %2810 = vrcp.f32 %v1597_v32 }
 0x338   : > { %2407 = vmatprep.mubr.msk.f32.mxu0 %vm1489_vm1, %v1652_v29  ;;  %2750 = vset.pattern.permute.xlu1 %v4327_v8  ;;  %v4365_v29 = vld [vmem:[#allocation19_spill] sm:$0xff] }
 0x339   : > { %1222 = vperm.xlu1 %2750, %v3919_v37   ;;  %2769 = vset.pattern.permute.xlu0 %v4330_v27 }
 0x33a   : > { %v1603_v4 = vpop.xlane.xlu0 %1602  ;;  %2101 = vperm.xlu0 %2769, %v2836_v61   ;;  %v4366_v61 = vld [vmem:[#allocation12_spill] sm:$0xff] }
 0x33b   : > { %2812 = vrcp.f32 %v1603_v4 }
 0x33c   : > { %v1600_v17 = vpop.xlane.xlu1 %1599 }
 0x33d   : > { %2814 = vrcp.f32 %v1600_v17  ;;  %1226 = vperm.xlu1 %2750, %v3933_v25  }
 0x33e   : > { %v1606_v2 = vpop.xlane.xlu0 %1605 }
 0x33f   : > { %2816 = vrcp.f32 %v1606_v2 }
 0x340   : > { %v1627_v41 = vpop.xlane.xlu1 %1626 }
 0x341   : > { %v2811_v48 = vpop.eup %2810  ;;  %2751 = vset.pattern.permute.xlu1 %v4330_v27 }
 0x342   : > { %942 = vperm.xlu1 %2751, %v3945_v6   ;;  %v1609_v37 = vpop.xlane.xlu0 %1608  ;;  %v1653_v44 = vmul.f32 %v2811_v48, %v4356_v45 }
 0x343   : > { %2818 = vrcp.f32 %v1609_v37  ;;  %v4367_v37 = vld [vmem:[#allocation20_spill] sm:$0xff] }
 0x344   : > { %v1633_v36 = vpop.xlane.xlu1 %1632  ;;  %2408 = vmatmul.mubr.msk.f32.gmra.mrb[2].mxu0 %vm1489_vm1, %v1653_v44 }
 0x345   : > { %v2813_v7 = vpop.eup %2812 }
 0x346   : > { %2752 = vset.pattern.permute.xlu1 %v4326_v54  ;;  %v1612_v15 = vpop.xlane.xlu0 %1611  ;;  %v1655_v0 = vmul.f32 %v2813_v7, %v4358_v14 }
 0x347   : > { %v2815_v25 = vpop.eup %2814  ;;  %2820 = vrcp.f32 %v1612_v15  ;;  %373 = vperm.xlu1 %2752, %v4025_v28  }
 0x348   : > { %v4029_v1 = vpop.permute.xlu1 %328  ;;  %v1654_v30 = vmul.f32 %v2815_v25, %v4357_v24 }
 0x349   : > { %v2817_v16 = vpop.eup %2816 }
 0x34a   : > { %2410 = vmatprep.mubr.msk.f32.mxu0 %vm1489_vm1, %v1654_v30  ;;  %v1615_v20 = vpop.xlane.xlu0 %1614  ;;  %v1656_v22 = vmul.f32 %v2817_v16, %v4359_v10 }
 0x34b   : > { %2822 = vrcp.f32 %v1615_v20  ;;  %2753 = vset.pattern.permute.xlu1 %v4325_v60  ;;  %2411 = vmatmul.mubr.msk.f32.gmra.mrb[4].mxu0 %vm1489_vm1, %v1655_v0 }
 0x34c   : > { %654 = vperm.xlu1 %2753, %v4025_v28   ;;  %v4038_v43 = vpop.permute.xlu1 %614  ;;  %2413 = vmatprep.mubr.msk.f32.mxu0 %vm1489_vm1, %v1656_v22  ;;  %v566_v22 = vmul.f32 %v3198_v5, %v4029_v1 }
 0x34d   : > { %v2819_v59 = vpop.eup %2818 }
 0x34e   : > { %v1618_v58 = vpop.xlane.xlu0 %1617  ;;  %v1657_v57 = vmul.f32 %v2819_v59, %v4360_v49  ;;  %v809_v59 = vmul.f32 %v3201_v9, %v4038_v43 }
 0x34f   : > { %2824 = vrcp.f32 %v1618_v58 }
 0x350   : > { %658 = vperm.xlu1 %2753, %v3822_v23   ;;  %v4043_v12 = vpop.permute.xlu1 %618  ;;  %2414 = vmatmul.mubr.msk.f32.gmra.mrb[6].mxu0 %vm1489_vm1, %v1657_v57 }
 0x351   : > { %v2821_v13 = vpop.eup %2820 }
 0x352   : > { %v1621_v33 = vpop.xlane.xlu0 %1620  ;;  %v1658_v21 = vmul.f32 %v2821_v13, %v4361_v47 }
 0x353   : > { %2826 = vrcp.f32 %v1621_v33 }
 0x354   : > { %2754 = vset.pattern.permute.xlu1 %v4327_v8  ;;  %2416 = vmatprep.mubr.msk.f32.mxu0 %vm1489_vm1, %v1658_v21  ;;  %2828 = vrcp.f32 %v1627_v41 }
 0x355   : > { %v2823_v56 = vpop.eup %2822  ;;  %1234 = vperm.xlu1 %2754, %v3945_v6   ;;  %v4050_v3 = vpop.permute.xlu1 %906 }
 0x356   : > { %v1624_v23 = vpop.xlane.xlu0 %1623  ;;  %v1659_v53 = vmul.f32 %v2823_v56, %v4362_v63 }
 0x357   : > { %2830 = vrcp.f32 %v1624_v23 }
 0x358   : > { %2417 = vmatmul.mubr.msk.f32.gmra.mrb[8].mxu0 %vm1489_vm1, %v1659_v53  ;;  %2832 = vrcp.f32 %v1633_v36  ;;  %v4368_v36 = vld [vmem:[#allocation14_spill] sm:$0xff] }
 0x359   : > { %v2825_v51 = vpop.eup %2824  ;;  %2755 = vset.pattern.permute.xlu1 %v4330_v27  ;;  %v911_v26 = vpop.permute.xlu1 %910 }
 0x35a   : > { %946 = vperm.xlu1 %2755, %v4025_v28   ;;  %v1630_v31 = vpop.xlane.xlu0 %1629  ;;  %v1660_v19 = vmul.f32 %v2825_v51, %v4363_v42  ;;  %v1102_v58 = vmul.f32 %v3206_v46, %v911_v26 }
 0x35b   : > { %2834 = vrcp.f32 %v1630_v31 }
 0x35c   : > { %2419 = vmatprep.mubr.msk.f32.mxu0 %vm1489_vm1, %v1660_v19 }
 0x35d   : > { %v2827_v6 = vpop.eup %2826 }
 0x35e   : > { %2756 = vset.pattern.permute.xlu1 %v4326_v54  ;;  %v4059_v39 = vpop.permute.xlu1 %333  ;;  %v1661_v11 = vmul.f32 %v2827_v6, %v4364_v55  ;;  %v2829_v38 = vpop.eup %2828 }
 0x35f   : > { %383 = vperm.xlu1 %2756, %v3964_v50   ;;  %v1663_v17 = vmul.f32 %v2829_v38, %v4366_v61  ;;  %v567_v19 = vmul.f32 %v3198_v5, %v4059_v39 }
 0x360   : > { %2420 = vmatmul.mubr.msk.f32.gmra.mrb[10].mxu0 %vm1489_vm1, %v1661_v11 }
 0x361   : > { %v2831_v40 = vpop.eup %2830 }
 0x362   : > { %v4067_v32 = vpop.permute.xlu1 %338  ;;  %v4069_v34 = vpop.permute.xlu0 %914  ;;  %v1662_v4 = vmul.f32 %v2831_v40, %v4365_v29 }
 0x363   : > { %388 = vperm.xlu1 %2756, %v250_v18   ;;  %v2833_v2 = vpop.eup %2832  ;;  %v568_v55 = vmul.f32 %v3198_v5, %v4067_v32  ;;  %v1103_v11 = vmul.f32 %v3206_v46, %v4069_v34 }
 0x364   : > { %2422 = vmatprep.mubr.msk.f32.mxu0 %vm1489_vm1, %v1662_v4  ;;  %v1665_v7 = vmul.f32 %v2833_v2, %v4368_v36 }
 0x365   : > { %v2835_v41 = vpop.eup %2834  ;;  %2423 = vmatmul.mubr.msk.f32.gmra.mrb[12].mxu0 %vm1489_vm1, %v1663_v17 }
 0x366   : > { %v4075_v48 = vpop.permute.xlu0 %926  ;;  %v1664_v45 = vmul.f32 %v2835_v41, %v4367_v37 }
 0x367   : > { %2757 = vset.pattern.permute.xlu1 %v4325_v60  ;;  %v623_v44 = vpop.permute.xlu1 %622 }
 0x368   : > { %666 = vperm.xlu1 %2757, %v250_v18   ;;  %2425 = vmatprep.mubr.msk.f32.mxu0 %vm1489_vm1, %v1664_v45  ;;  %v811_v26 = vmul.f32 %v3201_v9, %v623_v44  ;;  %v1106_v44 = vmul.f32 %v3206_v46, %v4075_v48 }
 0x369   : > { %2426 = vmatmul.mubr.msk.f32.gmra.mrb[14].mxu0 %vm1489_vm1, %v1665_v7 }
 0x36b   : > { %v1207_v15 = vpop.permute.xlu0 %1206 }
 0x36c   : > { %2758 = vset.pattern.permute.xlu1 %v4327_v8  ;;  %v1199_v25 = vpop.permute.xlu1 %1198  ;;  %v1395_v39 = vmul.f32 %v3219_v52, %v1207_v15 }
 0x36d   : > { %1238 = vperm.xlu1 %2758, %v4025_v28   ;;  %v810_v28 = vmul.f32 %v3201_v9, %v4043_v12  ;;  %v1393_v43 = vmul.f32 %v3219_v52, %v1199_v25 }
 0x36f   : > { %v4084_v24 = vpop.permute.xlu0 %1218  ;;  %v858_v57 = vadd.f32 %v810_v28, %v566_v22 }
 0x370   : > { %v1203_v30 = vpop.permute.xlu1 %1202 }
 0x371   : > { %2760 = vset.pattern.permute.xlu1 %v4330_v27  ;;  %v1394_v13 = vmul.f32 %v3219_v52, %v1203_v30  ;;  %v1150_v47 = vadd.f32 %v1102_v58, %v858_v57 }
 0x372   : > { %954 = vperm.xlu1 %2760, %v3964_v50  }
 0x373   : > { %v4088_v16 = vpop.permute.xlu0 %1230  ;;  %v1442_v56 = vadd.f32 %v1394_v13, %v1150_v47 }
 0x375   : > { %v919_v14 = vpop.permute.xlu1 %918 }
 0x376   : > { %958 = vperm.xlu1 %2760, %v250_v18  }
 0x377   : > { %v4090_v0 = vpop.permute.xlu0 %1242 }
 0x37a   : > { %2762 = vset.pattern.permute.xlu1 %v4326_v54  ;;  %v4093_v20 = vpop.permute.xlu1 %343  ;;  %v1101_v54 = vmul.f32 %v3206_v46, %v4050_v3 }
 0x37b   : > { %398 = vperm.xlu1 %2762, %v3978_v35   ;;  %v569_v36 = vmul.f32 %v3198_v5, %v4093_v20 }
 0x37c   : > { %v324_v10 = vpop.permute.xlu0 %323 }
 0x37d   : > { %v565_v49 = vmul.f32 %v3198_v5, %v324_v10 }
 0x37f   : > { %v857_v12 = vadd.f32 %v809_v59, %v565_v49  ;;  %2763 = vset.pattern.permute.xlu1 %v4325_v60  ;;  %v631_v33 = vpop.permute.xlu1 %630 }
 0x380   : > { %670 = vperm.xlu1 %2763, %v3903_v62   ;;  %v349_v1 = vpop.permute.xlu0 %348  ;;  %v813_v41 = vmul.f32 %v3201_v9, %v631_v33 }
 0x381   : > { %v1149_v21 = vadd.f32 %v1101_v54, %v857_v12  ;;  %v570_v2 = vmul.f32 %v3198_v5, %v349_v1 }
 0x382   : > { %v861_v15 = vadd.f32 %v813_v41, %v569_v36 }
 0x383   : > { %v635_v23 = vpop.permute.xlu1 %634  ;;  %v1441_v63 = vadd.f32 %v1393_v43, %v1149_v21 }
 0x384   : > { %2765 = vset.pattern.permute.xlu1 %v4327_v8  ;;  %v364_v53 = vpop.permute.xlu0 %363  ;;  %v814_v61 = vmul.f32 %v3201_v9, %v635_v23  ;;  %v1401_v23 = vmul.f32 %v3219_v52, %v4088_v16 }
 0x385   : > { %1246 = vperm.xlu1 %2765, %v3964_v50   ;;  %v2567_v3 = vpack.c.bf16 %v1442_v56, %v1441_v63  ;;  %v859_v50 = vadd.f32 %v811_v26, %v567_v19 }
 0x387   : > { %2568 = vmatprep.subr.bf16.mxu1 %v2567_v3 }
 0x388   : > { %v1211_v51 = vpop.permute.xlu1 %1210  ;;  %2570 = vmatpush3.bf16.msra.mxu1 %v2567_v3  ;;  %v4112_v60 = vpop.permute.xlu0 %378 }
 0x389   : > { %1250 = vperm.xlu1 %2765, %v250_v18   ;;  %v1396_v29 = vmul.f32 %v3219_v52, %v1211_v51 }
 0x38c   : > { %v4115_v31 = vpop.permute.xlu0 %393 }
 0x38d   : > { %2766 = vset.pattern.permute.xlu1 %v4330_v27  ;;  %v923_v42 = vpop.permute.xlu1 %922  ;;  %v1151_v27 = vadd.f32 %v1103_v11, %v859_v50 }
 0x38e   : > { %966 = vperm.xlu1 %2766, %v3978_v35   ;;  %v1104_v35 = vmul.f32 %v3206_v46, %v919_v14  ;;  %v1105_v7 = vmul.f32 %v3206_v46, %v923_v42  ;;  %v1398_v14 = vmul.f32 %v3219_v52, %v4084_v24  ;;  %v573_v24 = vmul.f32 %v3198_v5, %v364_v53 }
 0x38f   : > { %v1443_v34 = vadd.f32 %v1395_v39, %v1151_v27 }
 0x390   : > { %v1153_v28 = vadd.f32 %v1105_v7, %v861_v15 }
 0x391   : > { %v627_v6 = vpop.permute.xlu0 %626 }
 0x392   : > { %v812_v38 = vmul.f32 %v3201_v9, %v627_v6  ;;  %2767 = vset.pattern.permute.xlu1 %v4327_v8  ;;  %v354_v18 = vpop.permute.xlu1 %353 }
 0x393   : > { %1254 = vperm.xlu1 %2767, %v3903_v62   ;;  %v862_v62 = vadd.f32 %v814_v61, %v570_v2  ;;  %v571_v51 = vmul.f32 %v3198_v5, %v354_v18 }
 0x394   : > { %v860_v40 = vadd.f32 %v812_v38, %v568_v55 }
 0x395   : > { %v639_v37 = vpop.permute.xlu0 %638  ;;  %v1154_v25 = vadd.f32 %v1106_v44, %v862_v62  ;;  %v1404_v44 = vmul.f32 %v3219_v52, %v4090_v0 }
 0x396   : > { %v1152_v4 = vadd.f32 %v1104_v35, %v860_v40  ;;  %v359_v32 = vpop.permute.xlu1 %358  ;;  %v815_v21 = vmul.f32 %v3201_v9, %v639_v37 }
 0x397   : > { %v1446_v58 = vadd.f32 %v1398_v14, %v1154_v25  ;;  %v572_v26 = vmul.f32 %v3198_v5, %v359_v32 }
 0x398   : > { %v1444_v17 = vadd.f32 %v1396_v29, %v1152_v4  ;;  %v863_v50 = vadd.f32 %v815_v21, %v571_v51 }
 0x399   : > { %v651_v10 = vpop.permute.xlu0 %650 }
 0x39a   : > { %v2571_v8 = vpack.c.bf16 %v1444_v17, %v1443_v34  ;;  %v576_v17 = vmul.f32 %v3198_v5, %v4112_v60 }
 0x39b   : > { %v643_v45 = vpop.permute.xlu1 %642 }
 0x39c   : > { %2572 = vmatprep.subr.bf16.mxu1 %v2571_v8  ;;  %v816_v56 = vmul.f32 %v3201_v9, %v643_v45 }
 0x39d   : > { %2574 = vmatpush3.bf16.msra.mxu1 %v2571_v8  ;;  %v4142_v57 = vpop.permute.xlu0 %662  ;;  %v818_v8 = vmul.f32 %v3201_v9, %v651_v10 }
 0x39e   : > { %v864_v6 = vadd.f32 %v816_v56, %v572_v26 }
 0x3a0   : > { %v1215_v30 = vpop.permute.xlu1 %1214 }
 0x3a1   : > { %v1397_v22 = vmul.f32 %v3219_v52, %v1215_v30  ;;  %v4144_v54 = vpop.permute.xlu0 %674 }
 0x3a3   : > { %v1445_v59 = vadd.f32 %v1397_v22, %v1153_v28 }
 0x3a5   : > { %v931_v49 = vpop.permute.xlu1 %930  ;;  %v2575_v48 = vpack.c.bf16 %v1446_v58, %v1445_v59 }
 0x3a6   : > { %v939_v12 = vpop.permute.xlu0 %938  ;;  %v1107_v53 = vmul.f32 %v3206_v46, %v931_v49 }
 0x3a7   : > { %2576 = vmatprep.subr.bf16.mxu1 %v2575_v48  ;;  %v1109_v47 = vmul.f32 %v3206_v46, %v939_v12 }
 0x3a8   : > { %2578 = vmatpush3.bf16.msra.mxu1 %v2575_v48  ;;  %v1155_v38 = vadd.f32 %v1107_v53, %v863_v50 }
 0x3a9   : > { %v935_v20 = vpop.permute.xlu1 %934 }
 0x3aa   : > { %v1108_v42 = vmul.f32 %v3206_v46, %v935_v20  ;;  %v951_v32 = vpop.permute.xlu0 %950 }
 0x3ab   : > { %v1112_v62 = vmul.f32 %v3206_v46, %v951_v32  ;;  %v579_v32 = vmul.f32 %v3198_v5, %v4115_v31 }
 0x3ac   : > { %v1156_v27 = vadd.f32 %v1108_v42, %v864_v6 }
 0x3ae   : > { %v369_v13 = vpop.permute.xlu1 %368 }
 0x3af   : > { %v574_v61 = vmul.f32 %v3198_v5, %v369_v13 }
 0x3b1   : > { %v866_v45 = vadd.f32 %v818_v8, %v574_v61  ;;  %v824_v61 = vmul.f32 %v3201_v9, %v4144_v54 }
 0x3b3   : > { %v647_v33 = vpop.permute.xlu1 %646 }
 0x3b4   : > { %v817_v1 = vmul.f32 %v3201_v9, %v647_v33 }
 0x3b6   : > { %v865_v43 = vadd.f32 %v817_v1, %v573_v24 }
 0x3b8   : > { %v1157_v63 = vadd.f32 %v1109_v47, %v865_v43  ;;  %v1223_v3 = vpop.permute.xlu1 %1222 }
 0x3b9   : > { %v1399_v55 = vmul.f32 %v3219_v52, %v1223_v3  ;;  %v821_v3 = vmul.f32 %v3201_v9, %v4142_v57  ;;  %v963_v57 = vpop.permute.xlu0 %962 }
 0x3ba   : > { %v1449_v19 = vadd.f32 %v1401_v23, %v1157_v63 }
 0x3bb   : > { %v1447_v39 = vadd.f32 %v1399_v55, %v1155_v38 }
 0x3bc   : > { %v1227_v11 = vpop.permute.xlu1 %1226 }
 0x3bd   : > { %v1400_v16 = vmul.f32 %v3219_v52, %v1227_v11 }
 0x3bf   : > { %v1448_v35 = vadd.f32 %v1400_v16, %v1156_v27  ;;  %v221_v27 = vld [vmem:[%s4296_s4] sm:$0xff] }
 0x3c1   : > { %v943_v40 = vpop.permute.xlu1 %942  ;;  %v2579_v18 = vpack.c.bf16 %v1448_v35, %v1447_v39 }
 0x3c2   : > { %v1110_v41 = vmul.f32 %v3206_v46, %v943_v40 }
 0x3c3   : > { %2580 = vmatprep.subr.bf16.mxu1 %v2579_v18 }
 0x3c4   : > { %2582 = vmatpush3.bf16.msra.mxu1 %v2579_v18  ;;  %v1158_v15 = vadd.f32 %v1110_v41, %v866_v45 }
 0x3c6   : > { %v374_v29 = vpop.permute.xlu1 %373 }
 0x3c7   : > { %v575_v49 = vmul.f32 %v3198_v5, %v374_v29 }
 0x3cb   : > { %v655_v4 = vpop.permute.xlu1 %654 }
 0x3cc   : > { %v819_v59 = vmul.f32 %v3201_v9, %v655_v4 }
 0x3ce   : > { %v867_v48 = vadd.f32 %v819_v59, %v575_v49  ;;  %v226_v49 = vld [vmem:[%s4296_s4 + $0x28] sm:$0xff] }
 0x3cf   : > { %v659_v34 = vpop.permute.xlu1 %658 }
 0x3d0   : > { %v820_v2 = vmul.f32 %v3201_v9, %v659_v34  ;;  %v222_v34 = vld [vmem:[%s4296_s4 + $0x8] sm:$0xff] }
 0x3d2   : > { %v868_v37 = vadd.f32 %v820_v2, %v576_v17 }
 0x3d4   : > { %v1160_v36 = vadd.f32 %v1112_v62, %v868_v37  ;;  %v1235_v7 = vpop.permute.xlu1 %1234  ;;  %v1259_v37 = vpop.permute.xlu0 %1258 }
 0x3d5   : > { %v1402_v25 = vmul.f32 %v3219_v52, %v1235_v7  ;;  %v1408_v54 = vmul.f32 %v3219_v52, %v1259_v37 }
 0x3d6   : > { %v1452_v30 = vadd.f32 %v1404_v44, %v1160_v36 }
 0x3d7   : > { %v1450_v60 = vadd.f32 %v1402_v25, %v1158_v15  ;;  %v223_v25 = vld [vmem:[%s4296_s4 + $0x10] sm:$0xff] }
 0x3d9   : > { %v947_v14 = vpop.permute.xlu1 %946  ;;  %v2583_v28 = vpack.c.bf16 %v1450_v60, %v1449_v19 }
 0x3da   : > { %v1111_v0 = vmul.f32 %v3206_v46, %v947_v14 }
 0x3db   : > { %2584 = vmatprep.subr.bf16.mxu1 %v2583_v28 }
 0x3dc   : > { %2586 = vmatpush3.bf16.msra.mxu1 %v2583_v28  ;;  %v1159_v13 = vadd.f32 %v1111_v0, %v867_v48 }
 0x3de   : > { %v384_v10 = vpop.permute.xlu1 %383 }
 0x3df   : > { %v577_v56 = vmul.f32 %v3198_v5, %v384_v10 }
 0x3e1   : > { %v869_v42 = vadd.f32 %v821_v3, %v577_v56  ;;  %v230_v56 = vld [vmem:[%s4296_s4 + $0x48] sm:$0xff] }
 0x3e2   : > { %v389_v22 = vpop.permute.xlu1 %388 }
 0x3e3   : > { %v578_v51 = vmul.f32 %v3198_v5, %v389_v22 }
 0x3e7   : > { %v667_v58 = vpop.permute.xlu1 %666 }
 0x3e8   : > { %v822_v23 = vmul.f32 %v3201_v9, %v667_v58 }
 0x3ea   : > { %v870_v19 = vadd.f32 %v822_v23, %v578_v51  ;;  %v231_v51 = vld [vmem:[%s4296_s4 + $0x50] sm:$0xff] }
 0x3ec   : > { %v1239_v20 = vpop.permute.xlu1 %1238 }
 0x3ed   : > { %v1403_v12 = vmul.f32 %v3219_v52, %v1239_v20 }
 0x3ef   : > { %v1451_v33 = vadd.f32 %v1403_v12, %v1159_v13  ;;  %v227_v13 = vld [vmem:[%s4296_s4 + $0x30] sm:$0xff] }
 0x3f1   : > { %v955_v24 = vpop.permute.xlu1 %954  ;;  %v2587_v1 = vpack.c.bf16 %v1452_v30, %v1451_v33  ;;  %v228_v33 = vld [vmem:[%s4296_s4 + $0x38] sm:$0xff] }
 0x3f2   : > { %v1113_v26 = vmul.f32 %v3206_v46, %v955_v24 }
 0x3f3   : > { %2588 = vmatprep.subr.bf16.mxu1 %v2587_v1 }
 0x3f4   : > { %2590 = vmatpush3.bf16.msra.mxu1 %v2587_v1  ;;  %v1161_v55 = vadd.f32 %v1113_v26, %v869_v42 }
 0x3f5   : > { %v959_v47 = vpop.permute.xlu1 %958 }
 0x3f6   : > { %v1114_v53 = vmul.f32 %v3206_v46, %v959_v47 }
 0x3f8   : > { %v1162_v11 = vadd.f32 %v1114_v53, %v870_v19  ;;  %v232_v19 = vld [vmem:[%s4296_s4 + $0x58] sm:$0xff] }
 0x3fa   : > { %v399_v43 = vpop.permute.xlu1 %398 }
 0x3fb   : > { %v580_v39 = vmul.f32 %v3198_v5, %v399_v43  ;;  %v1115_v5 = vmul.f32 %v3206_v46, %v963_v57  ;;  %v229_v43 = vld [vmem:[%s4296_s4 + $0x40] sm:$0xff] }
 0x3fd   : > { %v872_v41 = vadd.f32 %v824_v61, %v580_v39 }
 0x3ff   : > { %v671_v21 = vpop.permute.xlu1 %670 }
 0x400   : > { %v823_v35 = vmul.f32 %v3201_v9, %v671_v21 }
 0x402   : > { %v871_v62 = vadd.f32 %v823_v35, %v579_v32  ;;  %v236_v35 = vld [vmem:[%s4296_s4 + $0x78] sm:$0xff] }
 0x404   : > { %v1247_v63 = vpop.permute.xlu1 %1246  ;;  %v1163_v44 = vadd.f32 %v1115_v5, %v871_v62 }
 0x405   : > { %v1405_v50 = vmul.f32 %v3219_v52, %v1247_v63 }
 0x407   : > { %v1453_v40 = vadd.f32 %v1405_v50, %v1161_v55 }
 0x408   : > { %v1251_v6 = vpop.permute.xlu1 %1250 }
 0x409   : > { %v1406_v38 = vmul.f32 %v3219_v52, %v1251_v6 }
 0x40a   : > { %v2406_v16 = vpop.f32.mrb[0].mxu0 }
 0x40b   : > { %v1454_v18 = vadd.f32 %v1406_v38, %v1162_v11  ;;  %v1828_v29 = vpop.f32.mrb[1].mxu0  ;;  %v1908_v45 = vmul.f32 %v2406_v16, %v222_v34  ;;  %v233_v11 = vld [vmem:[%s4296_s4 + $0x60] sm:$0xff]  ;;  %v235_v16 = vld [vmem:[%s4296_s4 + $0x70] sm:$0xff] }
 0x40c   : > { %v1907_v4 = vmul.f32 %v1828_v29, %v221_v27  ;;  %v234_v27 = vld [vmem:[%s4296_s4 + $0x68] sm:$0xff] }
 0x40d   : > { %v967_v17 = vpop.permute.xlu1 %966  ;;  %v2591_v2 = vpack.c.bf16 %v1454_v18, %v1453_v40 }
 0x40e   : > { %v1116_v8 = vmul.f32 %v3206_v46, %v967_v17  ;;  %1923 = vxpose.xlu1.b32.start [1/16] %v1907_v4, 128  ;;  %v224_v46 = vld [vmem:[%s4296_s4 + $0x18] sm:$0xff] }
 0x40f   : > { %2592 = vmatprep.subr.bf16.mxu1 %v2591_v2 }
 0x410   : > { %2594 = vmatpush3.bf16.msra.mxu1 %v2591_v2  ;;  %v1164_v31 = vadd.f32 %v1116_v8, %v872_v41 }
 0x412   : > { %1924 = vxpose.xlu1.b32.cont [2/16] %v1908_v45, 128  ;;  %v1255_v9 = vpop.permute.xlu1 %1254  ;;  %v1456_v7 = vadd.f32 %v1408_v54, %v1164_v31  ;;  %v2905_v54 = vmov 0.0|0.0  }
 0x413   : > { %v1407_v36 = vmul.f32 %v3219_v52, %v1255_v9  ;;  %v225_v52 = vld [vmem:[%s4296_s4 + $0x20] sm:$0xff] }
 0x415   : > { %v1455_v15 = vadd.f32 %v1407_v36, %v1163_v44  ;;  %v2907_v44 = vmov 0.0  }
 0x417   : > { %v2409_v30 = vpop.f32.mrb[2].mxu0  ;;  %v2595_v60 = vpack.c.bf16 %v1456_v7, %v1455_v15 }
 0x418   : > { %v1838_v14 = vpop.f32.mrb[3].mxu0  ;;  %v1910_v10 = vmul.f32 %v2409_v30, %v224_v46 }
 0x419   : > { %v1909_v28 = vmul.f32 %v1838_v14, %v223_v25  ;;  %2596 = vmatprep.subr.bf16.mxu1 %v2595_v60 }
 0x41a   : > { %2598 = vmatpush3.bf16.msra.mxu1 %v2595_v60 }
 0x41b   : > { %1925 = vxpose.xlu1.b32.cont [3/16] %v1909_v28, 128  ;;  %2599 = vmatprep.subr.bf16.mxu1 %v2905_v54 }
 0x41e   : > { %v2412_v22 = vpop.f32.mrb[4].mxu0 }
 0x41f   : > { %1926 = vxpose.xlu1.b32.cont [4/16] %v1910_v10, 128  ;;  %v1848_v59 = vpop.f32.mrb[5].mxu0  ;;  %v1912_v20 = vmul.f32 %v2412_v22, %v226_v49 }
 0x420   : > { %v1911_v58 = vmul.f32 %v1848_v59, %v225_v52 }
 0x423   : > { %1927 = vxpose.xlu1.b32.cont [5/16] %v1911_v58, 128  ;;  %v2415_v0 = vpop.f32.mrb[6].mxu0 }
 0x424   : > { %v1858_v48 = vpop.f32.mrb[7].mxu0  ;;  %v1914_v47 = vmul.f32 %v2415_v0, %v228_v33 }
 0x425   : > { %v1913_v12 = vmul.f32 %v1858_v48, %v227_v13 }
 0x427   : > { %1928 = vxpose.xlu1.b32.cont [6/16] %v1912_v20, 128 }
 0x42b   : > { %1929 = vxpose.xlu1.b32.cont [7/16] %v1913_v12, 128  ;;  %v2418_v24 = vpop.f32.mrb[8].mxu0 }
 0x42c   : > { %v1868_v1 = vpop.f32.mrb[9].mxu0  ;;  %v1916_v3 = vmul.f32 %v2418_v24, %v230_v56 }
 0x42d   : > { %v1915_v21 = vmul.f32 %v1868_v1, %v229_v43  ;;  %v285_v43 = vld [vmem:[%s4294_s2] sm:$0xf] }
 0x42f   : > { %1930 = vxpose.xlu1.b32.cont [8/16] %v1914_v47, 128 }
 0x433   : > { %1931 = vxpose.xlu1.b32.cont [9/16] %v1915_v21, 128  ;;  %v2421_v23 = vpop.f32.mrb[10].mxu0  ;;  %v2102_v21 = vpop.permute.xlu0 %2101 }
 0x434   : > { %v1878_v63 = vpop.f32.mrb[11].mxu0  ;;  %v1918_v6 = vmul.f32 %v2421_v23, %v232_v19 }
 0x435   : > { %v1917_v53 = vmul.f32 %v1878_v63, %v231_v51 }
 0x437   : > { %1932 = vxpose.xlu1.b32.cont [10/16] %v1916_v3, 128  ;;  %v4369_v3 = vld [vmem:[#allocation5_spill] sm:$0xff] }
 0x438   : > { %v2424_v26 = vpop.f32.mrb[12].mxu0 }
 0x439   : > { %v1888_v42 = vpop.f32.mrb[13].mxu0  ;;  %v1920_v57 = vmul.f32 %v2424_v26, %v234_v27 }
 0x43a   : > { %v1919_v38 = vmul.f32 %v1888_v42, %v233_v11 }
 0x43b   : > { %1933 = vxpose.xlu1.b32.cont [11/16] %v1917_v53, 128 }
 0x43c   : > { %v2427_v50 = vpop.f32.mrb[14].mxu0 }
 0x43d   : > { %v1898_v55 = vpop.f32.mrb[15].mxu0  ;;  %v1922_v40 = vmul.f32 %v2427_v50, %v236_v35 }
 0x43e   : > { %v1921_v39 = vmul.f32 %v1898_v55, %v235_v16 }
 0x43f   : > { %1934 = vxpose.xlu1.b32.cont [12/16] %v1918_v6, 128 }
 0x443   : > { %1935 = vxpose.xlu1.b32.cont [13/16] %v1919_v38, 128 }
 0x447   : > { %1936 = vxpose.xlu1.b32.cont [14/16] %v1920_v57, 128 }
 0x44b   : > { %1937 = vxpose.xlu1.b32.cont [15/16] %v1921_v39, 128 }
 0x44f   : > { %1938 = vxpose.xlu1.b32.end [16/16] %v1922_v40, 128 }
 0x493   : > { %v1939_v18 = vpop.trf.xlu1 }
 0x494   : > { %2460 = vmatprep.mubr.f32.mxu1 %v1939_v18 }
 0x497   : > { %v1940_v29 = vpop.trf.xlu1 }
 0x498   : > { %2461 = vmatmul.mubr.f32.vlgmr.msra.gmra.mrb[0].mxu1 %v1940_v29 }
 0x49b   : > { %v1941_v4 = vpop.trf.xlu1 }
 0x49c   : > { %2463 = vmatprep.mubr.f32.mxu1 %v1941_v4 }
 0x49f   : > { %v1942_v32 = vpop.trf.xlu1 }
 0x4a0   : > { %2464 = vmatmul.mubr.f32.gmra.mrb[2].mxu1 %v1942_v32 }
 0x4a3   : > { %v1943_v61 = vpop.trf.xlu1 }
 0x4a4   : > { %2466 = vmatprep.mubr.f32.mxu1 %v1943_v61 }
 0x4a7   : > { %v1944_v34 = vpop.trf.xlu1 }
 0x4a8   : > { %2467 = vmatmul.mubr.f32.gmra.mrb[4].mxu1 %v1944_v34 }
 0x4ab   : > { %v1945_v17 = vpop.trf.xlu1 }
 0x4ac   : > { %2469 = vmatprep.mubr.f32.mxu1 %v1945_v17 }
 0x4af   : > { %v1946_v2 = vpop.trf.xlu1 }
 0x4b0   : > { %2470 = vmatmul.mubr.f32.gmra.mrb[6].mxu1 %v1946_v2 }
 0x4b3   : > { %v1947_v8 = vpop.trf.xlu1 }
 0x4b4   : > { %2472 = vmatprep.mubr.f32.mxu1 %v1947_v8 }
 0x4b7   : > { %v1948_v41 = vpop.trf.xlu1 }
 0x4b8   : > { %2473 = vmatmul.mubr.f32.gmra.mrb[8].mxu1 %v1948_v41 }
 0x4bb   : > { %v1949_v62 = vpop.trf.xlu1 }
 0x4bc   : > { %2475 = vmatprep.mubr.f32.mxu1 %v1949_v62 }
 0x4bf   : > { %v1950_v37 = vpop.trf.xlu1 }
 0x4c0   : > { %2476 = vmatmul.mubr.f32.gmra.mrb[10].mxu1 %v1950_v37 }
 0x4c3   : > { %v1951_v45 = vpop.trf.xlu1 }
 0x4c4   : > { %2478 = vmatprep.mubr.f32.mxu1 %v1951_v45 }
 0x4c7   : > { %v1952_v5 = vpop.trf.xlu1 }
 0x4c8   : > { %2479 = vmatmul.mubr.f32.gmra.mrb[12].mxu1 %v1952_v5 }
 0x4cb   : > { %v1953_v31 = vpop.trf.xlu1 }
 0x4cc   : > { %2481 = vmatprep.mubr.f32.mxu1 %v1953_v31 }
 0x4cf   : > { %v1954_v9 = vpop.trf.xlu1 }
 0x4d0   : > { %2482 = vmatmul.mubr.f32.gmra.mrb[14].mxu1 %v1954_v9 }
 0x4d1   : > { %2516 = vmatprep.mubr.msk.f32.mxu1 %vm2906_vm3, %v2907_v44 }
 0x56b   : > { %v2462_v36 = vpop.f32.mrb[0].mxu1 }
 0x56c   : > { %v2021_v7 = vpop.f32.mrb[1].mxu1 }
 0x56d   : > { %v2600_v15 = vpack.c.bf16 %v2462_v36, %v2021_v7 }
 0x56f   : > { %2601 = vmatpush3.bf16.msra.mxu1 %v2600_v15 }
 0x570   : > { %2602 = vmatprep.subr.bf16.mxu1 %v2905_v54 }
 0x573   : > { %v2465_v25 = vpop.f32.mrb[2].mxu1 }
 0x574   : > { %v2031_v30 = vpop.f32.mrb[3].mxu1 }
 0x575   : > { %v2603_v60 = vpack.c.bf16 %v2465_v25, %v2031_v30 }
 0x577   : > { %2604 = vmatpush3.bf16.msra.mxu1 %v2603_v60 }
 0x578   : > { %2605 = vmatprep.subr.bf16.mxu1 %v2905_v54 }
 0x57b   : > { %v2468_v14 = vpop.f32.mrb[4].mxu1 }
 0x57c   : > { %v2041_v28 = vpop.f32.mrb[5].mxu1 }
 0x57d   : > { %v2606_v46 = vpack.c.bf16 %v2468_v14, %v2041_v28 }
 0x57f   : > { %2607 = vmatpush3.bf16.msra.mxu1 %v2606_v46 }
 0x580   : > { %2608 = vmatprep.subr.bf16.mxu1 %v2905_v54 }
 0x583   : > { %v2471_v10 = vpop.f32.mrb[6].mxu1 }
 0x584   : > { %v2051_v52 = vpop.f32.mrb[7].mxu1 }
 0x585   : > { %v2609_v22 = vpack.c.bf16 %v2471_v10, %v2051_v52 }
 0x587   : > { %2610 = vmatpush3.bf16.msra.mxu1 %v2609_v22 }
 0x588   : > { %2611 = vmatprep.subr.bf16.mxu1 %v2905_v54 }
 0x58b   : > { %v2474_v59 = vpop.f32.mrb[8].mxu1 }
 0x58c   : > { %v2061_v58 = vpop.f32.mrb[9].mxu1 }
 0x58d   : > { %v2612_v49 = vpack.c.bf16 %v2474_v59, %v2061_v58 }
 0x58f   : > { %2613 = vmatpush3.bf16.msra.mxu1 %v2612_v49 }
 0x590   : > { %2614 = vmatprep.subr.bf16.mxu1 %v2905_v54 }
 0x593   : > { %v2477_v0 = vpop.f32.mrb[10].mxu1 }
 0x594   : > { %v2071_v48 = vpop.f32.mrb[11].mxu1 }
 0x595   : > { %v2615_v20 = vpack.c.bf16 %v2477_v0, %v2071_v48 }
 0x597   : > { %2616 = vmatpush3.bf16.msra.mxu1 %v2615_v20 }
 0x598   : > { %2617 = vmatprep.subr.bf16.mxu1 %v2905_v54 }
 0x59b   : > { %v2480_v13 = vpop.f32.mrb[12].mxu1 }
 0x59c   : > { %v2081_v12 = vpop.f32.mrb[13].mxu1 }
 0x59d   : > { %v2618_v33 = vpack.c.bf16 %v2480_v13, %v2081_v12 }
 0x59f   : > { %2619 = vmatpush3.bf16.msra.mxu1 %v2618_v33 }
 0x5a0   : > { %2620 = vmatprep.subr.bf16.mxu1 %v2905_v54 }
 0x5a3   : > { %v2483_v24 = vpop.f32.mrb[14].mxu1 }
 0x5a4   : > { %v2091_v1 = vpop.f32.mrb[15].mxu1 }
 0x5a5   : > { %v2621_v47 = vpack.c.bf16 %v2483_v24, %v2091_v1 }
 0x5a7   : > { %2622 = vmatpush3.bf16.msra.mxu1 %v2621_v47 }
 0x5aa   : > { %2517 = vmatmul.mubr.f32.vlgmr.msra.gmra.mrb[16].mxu1 %v285_v43 }
 0x67d   : > { %v2170_v56 = vpop.f32.mrb[16].mxu1 }
 0x67e   : > { %v2171_v23 = vadd.f32 %v2170_v56, %v2102_v21  ;;  %v2518_v63 = vpop.f32.mrb[17].mxu1 }
 0x680   : > { %v2174_v51 = vadd.f32 %v2171_v23, %v4369_v3 }
 0x682   : > { %2175 = vst.msk [vmem:[%s215_s25] sm:$0xf] %vm287_vm0, %v2174_v51 }
 0x683   : > { %2850 = shalt.err (!%p2847_p3)
}
 0x684   : > { %s2851_s12 = scalar_lea.hbm %s4249_s7, 64  ;;  %s2855_s15 = scalar_lea.hbm %s4297_s5, 128 }
 0x685   : > { %p2852_p4 = scmp.ne.s32.totalorder %s4249_s7, %s2851_s12  ;;  %p2856_p9 = scmp.lt.u32.totalorder %s4249_s7, %s4297_s5 }
 0x686   : > { %p2857_p10 = scmp.lt.u32.totalorder %s2855_s15, %s2851_s12  ;;  %p2859_p12 = scmp.lt.u32.totalorder %s2851_s12, %s4249_s7 }
 0x687   : > { %p2853_p7 = pnand %p2852_p4, %p2977_p5 }
 0x688   : > { %p2858_p11 = por %p2857_p10, %p2856_p9 }
 0x689   : > { %p2854_p8 = pneg %p2853_p7 }
 0x68a   : > { %p2860_p13 = por %p2859_p12, %p2858_p11 }
 0x68c   : > { %p2861_p0 = pnand %p2860_p13, %p2854_p8 }
 0x68e   : > { %2864 = shalt.err (!%p2861_p0)
}
 0x68f   : > { %2623 = dma.vmem_to_hbm [thread:$0]  (%p2977_p5), %s4251_s26, 64, %s4249_s7, %s2177_s8  }
 0x690 PF: > { %p2629_p1 = scmp.ge.s32.totalorder %s2899_s21, 2  ;;  %s2202_s23 = sand.u32 1, %s2887_s18  }
 0x691   : > { %s2203_s25 = scalar_lea.sflag [#allocation3], %s2202_s23 }
 0x692   : > { %p2626_p2 = pnand %p2629_p1, %p2981_p6 }
 0x694   : > { %2882 = dma.done.wait (!%p2626_p2), %s2203_s25, 64  }
 0x695   : > { %2884 = vsyncadd (!%p2626_p2), %s2203_s25, 4294967232  ;;  %p15_p3 = scmp.ge.s32.totalorder %s2964_s24, 4   ;;  %s4370_s18 = smov %s2891_s19 }
 0x696   : > { %s4371_s19 = smov %s2895_s20  ;;  %s4372_s20 = smov %s2975_s27 }
 0x697   : > { %s4373_s21 = smov %s2964_s24  ;;  %17 = sbr.rel (!%p15_p3) target bundleno = 3 (0x3), region = 75 }
 0x69e   :  { %2208 = vsyncpa [#allocation3], 1 }
 0x69f   :  { %2210 = vsyncpa [#allocation3 + $0x1], 1 }

</bundles_post_ra>
